<compile_context>
chip_gen: v7x
topology: tpu7x:2x2x1
jax: 0.10.0
libtpu: 0.0.40
codegen_flags: <defaults>
</compile_context>

<pallas_src>
import functools
import math

import jax
import jax.numpy as jnp
from jax.experimental import pallas as pl
from jax.experimental.pallas import tpu as pltpu

NEG_SLOPE = 0.01  # nn.LeakyReLU default
N_RES = 6


def _leaky(x):
    return jnp.where(x > 0, x, NEG_SLOPE * x)


def _round_up(x, m):
    return ((x + m - 1) // m) * m


def _vmem_limit_bytes():
    # v5e/v6e: 128 MiB physical -> allow 64 MiB; v7x: 64 MiB physical -> 32 MiB.
    try:
        cap = pltpu.get_tpu_info().vmem_capacity_bytes
        return int(min(cap // 2, 100 * 1024 * 1024))
    except Exception:
        return 32 * 1024 * 1024


_VMEM_LIMIT = _vmem_limit_bytes()


# --------------------------------------------------------------------------
# Kernel 1: stem conv1 as a lane-dense GEMM (Cout, K) x (K, M) + LeakyReLU
# --------------------------------------------------------------------------

def _stem_gemm_kernel(p_ref, w_ref, b_ref, o_ref):
    # p: (K, tm) bf16, w: (Cout, K) bf16 -> f32 accumulate on the MXU.
    acc = jnp.dot(w_ref[...], p_ref[0], preferred_element_type=jnp.float32)
    o_ref[0] = _leaky(acc + b_ref[...]).astype(o_ref.dtype)


def stem_gemm(patches, w, b, *, tm_max=2048):
    """(N, K, M) bf16 x (Cout, K) bf16 -> (N, Cout, M) bf16, LeakyReLU fused.

    M (flattened output spatial) sits on lanes / the MXU N dim, so stores are
    lane-dense.  Grid = (batch, M-tiles), both parallel.
    """
    n, k, m = patches.shape
    cout = w.shape[0]
    tm = min(_round_up(m, 128), tm_max)
    m_pad = _round_up(m, tm)
    if m_pad != m:
        patches = jnp.pad(patches, ((0, 0), (0, 0), (0, m_pad - m)))
    grid = (n, m_pad // tm)

    flops = 2 * n * cout * k * m_pad
    bytes_accessed = n * (k * m_pad + cout * m_pad) * 2 + cout * k * 2 + cout * 4

    out = pl.pallas_call(
        _stem_gemm_kernel,
        out_shape=jax.ShapeDtypeStruct((n, cout, m_pad), jnp.bfloat16),
        grid=grid,
        in_specs=[
            pl.BlockSpec((1, k, tm), lambda i, j: (i, 0, j)),     # patches tile
            pl.BlockSpec((cout, k), lambda i, j: (0, 0)),         # weight resident
            pl.BlockSpec((cout, 1), lambda i, j: (0, 0)),         # bias resident
        ],
        out_specs=pl.BlockSpec((1, cout, tm), lambda i, j: (i, 0, j)),
        compiler_params=pltpu.CompilerParams(
            dimension_semantics=("parallel", "parallel"),
            vmem_limit_bytes=_VMEM_LIMIT),
        cost_estimate=pl.CostEstimate(flops=int(flops), transcendentals=0,
                                      bytes_accessed=int(bytes_accessed)),
    )(patches, w, b)
    return out[:, :, :m]


# --------------------------------------------------------------------------
# Kernel 2: fused tail = conv2(4x4 s2, via pre-im2col'd patches) + Leaky,
#           conv3(3x3) + Leaky, 6x ResBlock, Leaky, conv_out(1x1), Leaky.
#           One grid step per batch element; all weights VMEM-resident.
# --------------------------------------------------------------------------

def _tail_kernel(p2_ref, w2c_ref, b2c_ref, w3_ref, b3_ref, w1s_ref, b1s_ref,
                 w2s_ref, b2s_ref, wo_ref, bo_ref, o_ref, *, H, W, C, n_res):
    HW = H * W

    # Column-validity masks, built in-kernel (no DMA'd mask input).  Under the
    # flat spatial-on-lane layout a +/-1 column shift wraps into the
    # neighbouring row, so those taps must be zeroed at x == 0 / x == W-1.
    col = jax.lax.broadcasted_iota(jnp.int32, (1, HW), 1) % W
    ml = (col != 0).astype(jnp.float32)          # dx == -1 invalid at x == 0
    mr = (col != (W - 1)).astype(jnp.float32)    # dx == +1 invalid at x == W-1

    # Flat H-padding: a shift of +-(W+1) lanes covers every tap; out-of-range
    # rows land in these zero lanes, so no H masks are needed.
    zpad = jnp.zeros((C, W + 1), jnp.float32)

    def conv3x3(a, w, b):
        """3x3 / stride 1 / pad 1 conv of a (C, HW) f32 plane as a single
        (Cout, 9C) x (9C, HW) MXU matmul (merged-K, lane-dense N = HW)."""
        apad = jnp.concatenate([zpad, a, zpad], axis=1)      # (C, HW + 2W + 2)
        taps = []
        for kh in range(3):
            for kw in range(3):
                s = (kh - 1) * W + (kw - 1)
                t = apad[:, W + 1 + s:W + 1 + s + HW]        # static lane slice
                if kw == 0:
                    t = t * ml                               # f32 VPU (v5e-safe)
                elif kw == 2:
                    t = t * mr
                taps.append(t.astype(jnp.bfloat16))
        patches = jnp.concatenate(taps, axis=0)              # (9C, HW) bf16
        return jnp.dot(w, patches, preferred_element_type=jnp.float32) + b

    # conv2 (4x4 s2 p1, pre-im2col'd in XLA glue) as a GEMM + LeakyReLU.
    a = _leaky(jnp.dot(w2c_ref[...], p2_ref[0],
                       preferred_element_type=jnp.float32) + b2c_ref[...])

    # conv3 (3x3) + LeakyReLU
    a = _leaky(conv3x3(a, w3_ref[...], b3_ref[...]))

    # 6 fused ResBlocks: relu(conv1x1(relu(conv3x3(a))) + a)
    # TODO(synk): switch to lax.fori_loop over r (indexing w1s/w2s by r) once
    # HW*C is large enough that the unrolled f32 temporaries start spilling.
    for r in range(n_res):
        h = jnp.maximum(conv3x3(a, w1s_ref[r], b1s_ref[r]), 0.0)
        y = jnp.dot(w2s_ref[r], h.astype(jnp.bfloat16),
                    preferred_element_type=jnp.float32) + b2s_ref[r]
        a = jnp.maximum(y + a, 0.0)

    # LeakyReLU -> conv_out (1x1) -> LeakyReLU; output stays (E, HW): lane-dense.
    a = _leaky(a)
    y = jnp.dot(wo_ref[...], a.astype(jnp.bfloat16),
                preferred_element_type=jnp.float32) + bo_ref[...]
    o_ref[0] = _leaky(y)
    # TODO(synk): for very large H*W, add a second "parallel" grid axis over
    # row tiles with a 1-row halo so v7x's two TensorCores both get work at
    # batch=1 and the per-step working set stays inside v7x's 64 MiB VMEM.


def tail_forward(p2, params, H, W):
    n, K2, HW = p2.shape
    C = params["w3"].shape[0]
    E = params["wo"].shape[0]
    n_res = params["w1s"].shape[0]

    w_elems = C * K2 + (1 + n_res) * 9 * C * C + n_res * C * C + E * C
    flops = 2 * n * HW * w_elems
    bytes_accessed = (n * (K2 * HW * 2 + E * HW * 4)          # in (bf16) + out (f32)
                      + w_elems * 2                           # bf16 weights
                      + ((2 + 2 * n_res) * C + E) * 4)        # f32 biases

    return pl.pallas_call(
        functools.partial(_tail_kernel, H=H, W=W, C=C, n_res=n_res),
        out_shape=jax.ShapeDtypeStruct((n, E, HW), jnp.float32),
        grid=(n,),
        in_specs=[
            pl.BlockSpec((1, K2, HW), lambda i: (i, 0, 0)),      # conv2 patches
            pl.BlockSpec((C, K2), lambda i: (0, 0)),             # conv2 weight
            pl.BlockSpec((C, 1), lambda i: (0, 0)),
            pl.BlockSpec((C, 9 * C), lambda i: (0, 0)),          # conv3 weight
            pl.BlockSpec((C, 1), lambda i: (0, 0)),
            pl.BlockSpec((n_res, C, 9 * C), lambda i: (0, 0, 0)),  # res 3x3
            pl.BlockSpec((n_res, C, 1), lambda i: (0, 0, 0)),
            pl.BlockSpec((n_res, C, C), lambda i: (0, 0, 0)),      # res 1x1
            pl.BlockSpec((n_res, C, 1), lambda i: (0, 0, 0)),
            pl.BlockSpec((E, C), lambda i: (0, 0)),                # conv_out
            pl.BlockSpec((E, 1), lambda i: (0, 0)),
        ],
        out_specs=pl.BlockSpec((1, E, HW), lambda i: (i, 0, 0)),
        compiler_params=pltpu.CompilerParams(
            dimension_semantics=("parallel",),
            vmem_limit_bytes=_VMEM_LIMIT),
        cost_estimate=pl.CostEstimate(flops=int(flops), transcendentals=0,
                                      bytes_accessed=int(bytes_accessed)),
    )(p2, params["c2_w"], params["c2_b"], params["w3"], params["b3"],
      params["w1s"], params["b1s"], params["w2s"], params["b2s"],
      params["wo"], params["bo"])


# --------------------------------- glue ------------------------------------

def _im2col_nchw(x, k, s, p):
    """NCHW -> (N, k*k*C, Ho*Wo) patches; K ordered (kh, kw, cin)."""
    n, c, h, w = x.shape
    xp = jnp.pad(x, ((0, 0), (0, 0), (p, p), (p, p)))
    ho = (h + 2 * p - k) // s + 1
    wo = (w + 2 * p - k) // s + 1
    cols = []
    for kh in range(k):
        for kw in range(k):
            cols.append(xp[:, :, kh:kh + ho * s:s, kw:kw + wo * s:s])
    pat = jnp.concatenate(cols, axis=1)                  # (N, k*k*C, Ho, Wo)
    return pat.reshape(n, k * k * c, ho * wo), (ho, wo)


# --------------------------------- params ----------------------------------

def _conv_init(key, k, cin, cout):
    """PyTorch Conv2d default init: U(-1/sqrt(fan_in), +1/sqrt(fan_in))."""
    wkey, bkey = jax.random.split(key)
    bound = 1.0 / math.sqrt(k * k * cin)
    w = jax.random.uniform(wkey, (cout, cin, k, k), jnp.float32, -bound, bound)
    b = jax.random.uniform(bkey, (cout,), jnp.float32, -bound, bound)
    return w, b


def _w_flat(w):
    """(cout, cin, k, k) -> (cout, k*k*cin); K ordered (kh, kw, cin)."""
    cout, cin, k, _ = w.shape
    return jnp.transpose(w, (0, 2, 3, 1)).reshape(cout, k * k * cin)


def make_encoder_params(key, nd, embed_dim, n_res=N_RES):
    c = 2 * nd
    keys = jax.random.split(key, 4 + 2 * n_res)
    w1, b1 = _conv_init(keys[0], 4, 3, nd)
    w2, b2 = _conv_init(keys[1], 4, nd, c)
    w3, b3 = _conv_init(keys[2], 3, c, c)
    wo, bo = _conv_init(keys[3], 1, c, embed_dim)
    r_w1, r_b1, r_w2, r_b2 = [], [], [], []
    for i in range(n_res):
        w, b = _conv_init(keys[4 + 2 * i], 3, c, c)
        r_w1.append(_w_flat(w)); r_b1.append(b.reshape(c, 1))
        w, b = _conv_init(keys[5 + 2 * i], 1, c, c)
        r_w2.append(w.reshape(c, c)); r_b2.append(b.reshape(c, 1))
    return {
        # stem conv1 (GEMM layout (cout, k*k*cin)); weights bf16, biases f32
        "c1_w": _w_flat(w1).astype(jnp.bfloat16), "c1_b": b1.reshape(nd, 1),
        # fused tail
        "c2_w": _w_flat(w2).astype(jnp.bfloat16), "c2_b": b2.reshape(c, 1),
        "w3": _w_flat(w3).astype(jnp.bfloat16), "b3": b3.reshape(c, 1),
        "w1s": jnp.stack(r_w1, 0).astype(jnp.bfloat16),    # (n_res, C, 9C)
        "b1s": jnp.stack(r_b1, 0),                         # (n_res, C, 1)
        "w2s": jnp.stack(r_w2, 0).astype(jnp.bfloat16),    # (n_res, C, C)
        "b2s": jnp.stack(r_b2, 0),                         # (n_res, C, 1)
        "wo": wo.reshape(embed_dim, c).astype(jnp.bfloat16),
        "bo": bo.reshape(embed_dim, 1),
    }


# -------------------------------- encoder ----------------------------------

def encoder_forward(params, x_nchw):
    n = x_nchw.shape[0]
    # stem conv1 (4x4, s2, p1) + LeakyReLU: Pallas GEMM, lane-dense bf16 output
    p1, (h1, w1) = _im2col_nchw(x_nchw.astype(jnp.bfloat16), 4, 2, 1)
    y1 = stem_gemm(p1, params["c1_w"], params["c1_b"])        # (N, nd, h1*w1)
    y1 = y1.reshape(n, -1, h1, w1)
    # conv2 im2col in cheap XLA glue (bf16); its GEMM + everything after is one
    # fused pallas_call.
    p2, (h2, w2) = _im2col_nchw(y1, 4, 2, 1)                  # (N, 16*nd, h2*w2)
    out = tail_forward(p2, params, h2, w2)                    # (N, E, h2*w2) f32
    return out.reshape(n, -1, h2, w2)                         # already NCHW


if __name__ == "__main__":
    nd, embed_dim = 8, 16
    key = jax.random.PRNGKey(0)
    pkey, xkey = jax.random.split(key)

    params = make_encoder_params(pkey, nd, embed_dim)
    x = jax.random.normal(xkey, (2, 3, 16, 16), jnp.float32)  # NCHW like PyTorch

    out = jax.jit(encoder_forward)(params, x)
    out = jax.block_until_ready(out)

    assert out.shape == (2, embed_dim, 4, 4), out.shape
    assert out.dtype == jnp.float32
    assert bool(jnp.isfinite(out).all())
    print("KERNEL_OK")
</pallas_src>

<mosaic_0001>
module attributes {stable_mosaic.version = 11 : i64} {
  func.func @_stem_gemm_kernel(%arg0: i32, %arg1: i32, %arg2: memref<1x48x128xbf16, #tpu.memory_space<vmem>>, %arg3: memref<8x48xbf16, #tpu.memory_space<vmem>>, %arg4: memref<8x1xf32, #tpu.memory_space<vmem>>, %arg5: memref<1x8x128xbf16, #tpu.memory_space<vmem>>) attributes {dimension_semantics = [#tpu.dimension_semantics<parallel>, #tpu.dimension_semantics<parallel>], iteration_bounds = array<i64: 2, 1>, scalar_prefetch = 0 : i64, scratch_operands = 0 : i64, tpu.core_type = #tpu.core_type<tc>, window_params = [{transform_indices = @transform_0, window_bounds = array<i64: 1, 48, 128>}, {pipeline_mode = #tpu.pipeline_mode<synchronous>, transform_indices = @transform_1, window_bounds = array<i64: 8, 48>}, {pipeline_mode = #tpu.pipeline_mode<synchronous>, transform_indices = @transform_2, window_bounds = array<i64: 8, 1>}, {transform_indices = @transform_3, window_bounds = array<i64: 1, 8, 128>}]} {
    %c0 = arith.constant 0 : index
    %c0_0 = arith.constant 0 : index
    %0 = vector.load %arg3[%c0, %c0_0] : memref<8x48xbf16, #tpu.memory_space<vmem>>, vector<8x48xbf16>
    %c0_1 = arith.constant 0 : index
    %c0_2 = arith.constant 0 : index
    %c0_3 = arith.constant 0 : index
    %1 = vector.load %arg2[%c0_1, %c0_2, %c0_3] : memref<1x48x128xbf16, #tpu.memory_space<vmem>>, vector<1x48x128xbf16>
    %2 = vector.shape_cast %1 : vector<1x48x128xbf16> to vector<48x128xbf16>
    %cst = arith.constant dense<0.000000e+00> : vector<8x128xf32>
    %3 = tpu.matmul %0, %2, %cst {dimension_numbers = #tpu.dot_dimension_numbers<[1], [0], [0], [1], [0, 0, 1, 1], [], []>} : vector<8x48xbf16>, vector<48x128xbf16>, vector<8x128xf32> -> vector<8x128xf32>
    %c0_4 = arith.constant 0 : index
    %c0_5 = arith.constant 0 : index
    %4 = vector.load %arg4[%c0_4, %c0_5] : memref<8x1xf32, #tpu.memory_space<vmem>>, vector<8x1xf32>
    %5 = vector.broadcast %4 : vector<8x1xf32> to vector<8x128xf32>
    %6 = arith.addf %3, %5 : vector<8x128xf32>
    %cst_6 = arith.constant 0.000000e+00 : f32
    %7 = vector.broadcast %cst_6 : f32 to vector<8x128xf32>
    %8 = arith.cmpf ogt, %6, %7 : vector<8x128xf32>
    %cst_7 = arith.constant 0.00999999977 : f32
    %9 = vector.broadcast %cst_7 : f32 to vector<8x128xf32>
    %10 = arith.mulf %9, %6 : vector<8x128xf32>
    %11 = arith.select %8, %6, %10 : vector<8x128xi1>, vector<8x128xf32>
    %12 = arith.truncf %11 : vector<8x128xf32> to vector<8x128xbf16>
    %c0_8 = arith.constant 0 : index
    %c0_9 = arith.constant 0 : index
    %c0_10 = arith.constant 0 : index
    %13 = vector.load %arg5[%c0_8, %c0_9, %c0_10] : memref<1x8x128xbf16, #tpu.memory_space<vmem>>, vector<1x8x128xbf16>
    %14 = vector.shape_cast %13 : vector<1x8x128xbf16> to vector<8x128xbf16>
    %15 = vector.shape_cast %12 : vector<8x128xbf16> to vector<1x8x128xbf16>
    tpu.vector_store %arg5[%c0_8, %c0_9, %c0_10], %15 {strides = array<i32>} : memref<1x8x128xbf16, #tpu.memory_space<vmem>>, vector<1x8x128xbf16>,
    return
  }
  func.func @transform_0(%arg0: i32, %arg1: i32) -> (i32, i32, i32) {
    %c0_i32 = arith.constant 0 : i32
    %c0_i32_0 = arith.constant 0 : i32
    return %arg0, %c0_i32, %arg1 : i32, i32, i32
  }
  func.func @transform_1(%arg0: i32, %arg1: i32) -> (i32, i32) {
    %c0_i32 = arith.constant 0 : i32
    %c0_i32_0 = arith.constant 0 : i32
    %c0_i32_1 = arith.constant 0 : i32
    return %c0_i32, %c0_i32_0 : i32, i32
  }
  func.func @transform_2(%arg0: i32, %arg1: i32) -> (i32, i32) {
    %c0_i32 = arith.constant 0 : i32
    %c0_i32_0 = arith.constant 0 : i32
    %c0_i32_1 = arith.constant 0 : i32
    return %c0_i32, %c0_i32_0 : i32, i32
  }
  func.func @transform_3(%arg0: i32, %arg1: i32) -> (i32, i32, i32) {
    %c0_i32 = arith.constant 0 : i32
    %c0_i32_0 = arith.constant 0 : i32
    return %arg0, %c0_i32, %arg1 : i32, i32, i32
  }
}

module attributes {stable_mosaic.version = 11 : i64} {
  func.func @_tail_kernel(%arg0: i32, %arg1: memref<1x128x16xbf16, #tpu.memory_space<vmem>>, %arg2: memref<16x128xbf16, #tpu.memory_space<vmem>>, %arg3: memref<16x1xf32, #tpu.memory_space<vmem>>, %arg4: memref<16x144xbf16, #tpu.memory_space<vmem>>, %arg5: memref<16x1xf32, #tpu.memory_space<vmem>>, %arg6: memref<6x16x144xbf16, #tpu.memory_space<vmem>>, %arg7: memref<6x16x1xf32, #tpu.memory_space<vmem>>, %arg8: memref<6x16x16xbf16, #tpu.memory_space<vmem>>, %arg9: memref<6x16x1xf32, #tpu.memory_space<vmem>>, %arg10: memref<16x16xbf16, #tpu.memory_space<vmem>>, %arg11: memref<16x1xf32, #tpu.memory_space<vmem>>, %arg12: memref<1x16x16xf32, #tpu.memory_space<vmem>>) attributes {dimension_semantics = [#tpu.dimension_semantics<parallel>], iteration_bounds = array<i64: 2>, scalar_prefetch = 0 : i64, scratch_operands = 0 : i64, tpu.core_type = #tpu.core_type<tc>, window_params = [{transform_indices = @transform_0, window_bounds = array<i64: 1, 128, 16>}, {pipeline_mode = #tpu.pipeline_mode<synchronous>, transform_indices = @transform_1, window_bounds = array<i64: 16, 128>}, {pipeline_mode = #tpu.pipeline_mode<synchronous>, transform_indices = @transform_2, window_bounds = array<i64: 16, 1>}, {pipeline_mode = #tpu.pipeline_mode<synchronous>, transform_indices = @transform_3, window_bounds = array<i64: 16, 144>}, {pipeline_mode = #tpu.pipeline_mode<synchronous>, transform_indices = @transform_4, window_bounds = array<i64: 16, 1>}, {pipeline_mode = #tpu.pipeline_mode<synchronous>, transform_indices = @transform_5, window_bounds = array<i64: 6, 16, 144>}, {pipeline_mode = #tpu.pipeline_mode<synchronous>, transform_indices = @transform_6, window_bounds = array<i64: 6, 16, 1>}, {pipeline_mode = #tpu.pipeline_mode<synchronous>, transform_indices = @transform_7, window_bounds = array<i64: 6, 16, 16>}, {pipeline_mode = #tpu.pipeline_mode<synchronous>, transform_indices = @transform_8, window_bounds = array<i64: 6, 16, 1>}, {pipeline_mode = #tpu.pipeline_mode<synchronous>, transform_indices = @transform_9, window_bounds = array<i64: 16, 16>}, {pipeline_mode = #tpu.pipeline_mode<synchronous>, transform_indices = @transform_10, window_bounds = array<i64: 16, 1>}, {transform_indices = @transform_11, window_bounds = array<i64: 1, 16, 16>}]} {
    %0 = tpu.iota {dimensions = array<i32: 1>} : vector<1x16xi32>
    %c4_i32 = arith.constant 4 : i32
    %c0_i32 = arith.constant 0 : i32
    %1 = arith.cmpi eq, %c4_i32, %c0_i32 : i32
    %c1_i32 = arith.constant 1 : i32
    %2 = arith.select %1, %c1_i32, %c4_i32 : i32
    %3 = vector.broadcast %2 : i32 to vector<1x16xi32>
    %4 = arith.remsi %0, %3 : vector<1x16xi32>
    %c0_i32_0 = arith.constant 0 : i32
    %5 = vector.broadcast %c0_i32_0 : i32 to vector<1x16xi32>
    %6 = arith.cmpi ne, %4, %5 : vector<1x16xi32>
    %c0_i32_1 = arith.constant 0 : i32
    %7 = vector.broadcast %c0_i32_1 : i32 to vector<1x16xi32>
    %8 = arith.cmpi slt, %4, %7 : vector<1x16xi32>
    %c0_i32_2 = arith.constant 0 : i32
    %9 = arith.cmpi slt, %2, %c0_i32_2 : i32
    %10 = vector.broadcast %9 : i1 to vector<1x16xi1>
    %11 = vector.broadcast %10 : vector<1x16xi1> to vector<1x16xi1>
    %12 = arith.xori %8, %11 : vector<1x16xi1>
    %13 = arith.andi %12, %6 : vector<1x16xi1>
    %14 = vector.broadcast %2 : i32 to vector<1x16xi32>
    %15 = arith.addi %4, %14 : vector<1x16xi32>
    %16 = arith.select %13, %15, %4 : vector<1x16xi1>, vector<1x16xi32>
    %c0_i32_3 = arith.constant 0 : i32
    %17 = vector.broadcast %c0_i32_3 : i32 to vector<1x16xi32>
    %18 = arith.cmpi ne, %16, %17 : vector<1x16xi32>
    %19 = arith.extui %18 : vector<1x16xi1> to vector<1x16xi32>
    %20 = arith.sitofp %19 : vector<1x16xi32> to vector<1x16xf32>
    %c3_i32 = arith.constant 3 : i32
    %21 = vector.broadcast %c3_i32 : i32 to vector<1x16xi32>
    %22 = arith.cmpi ne, %16, %21 : vector<1x16xi32>
    %23 = arith.extui %22 : vector<1x16xi1> to vector<1x16xi32>
    %24 = arith.sitofp %23 : vector<1x16xi32> to vector<1x16xf32>
    %cst = arith.constant 0.000000e+00 : f32
    %25 = vector.broadcast %cst : f32 to vector<16x5xf32>
    %c0 = arith.constant 0 : index
    %c0_4 = arith.constant 0 : index
    %26 = vector.load %arg2[%c0, %c0_4] : memref<16x128xbf16, #tpu.memory_space<vmem>>, vector<16x128xbf16>
    %c0_5 = arith.constant 0 : index
    %c0_6 = arith.constant 0 : index
    %c0_7 = arith.constant 0 : index
    %27 = vector.load %arg1[%c0_5, %c0_6, %c0_7] : memref<1x128x16xbf16, #tpu.memory_space<vmem>>, vector<1x128x16xbf16>
    %28 = vector.shape_cast %27 : vector<1x128x16xbf16> to vector<128x16xbf16>
    %cst_8 = arith.constant dense<0.000000e+00> : vector<16x16xf32>
    %29 = tpu.matmul %26, %28, %cst_8 {dimension_numbers = #tpu.dot_dimension_numbers<[1], [0], [0], [1], [0, 0, 1, 1], [], []>} : vector<16x128xbf16>, vector<128x16xbf16>, vector<16x16xf32> -> vector<16x16xf32>
    %c0_9 = arith.constant 0 : index
    %c0_10 = arith.constant 0 : index
    %30 = vector.load %arg3[%c0_9, %c0_10] : memref<16x1xf32, #tpu.memory_space<vmem>>, vector<16x1xf32>
    %31 = vector.broadcast %30 : vector<16x1xf32> to vector<16x16xf32>
    %32 = arith.addf %29, %31 : vector<16x16xf32>
    %cst_11 = arith.constant 0.000000e+00 : f32
    %33 = vector.broadcast %cst_11 : f32 to vector<16x16xf32>
    %34 = arith.cmpf ogt, %32, %33 : vector<16x16xf32>
    %cst_12 = arith.constant 0.00999999977 : f32
    %35 = vector.broadcast %cst_12 : f32 to vector<16x16xf32>
    %36 = arith.mulf %35, %32 : vector<16x16xf32>
    %37 = arith.select %34, %32, %36 : vector<16x16xi1>, vector<16x16xf32>
    %c0_13 = arith.constant 0 : index
    %c0_14 = arith.constant 0 : index
    %38 = vector.load %arg4[%c0_13, %c0_14] : memref<16x144xbf16, #tpu.memory_space<vmem>>, vector<16x144xbf16>
    %c0_15 = arith.constant 0 : index
    %c0_16 = arith.constant 0 : index
    %39 = vector.load %arg5[%c0_15, %c0_16] : memref<16x1xf32, #tpu.memory_space<vmem>>, vector<16x1xf32>
    %40 = tpu.concatenate %25, %37, %25 in 1 : vector<16x5xf32>, vector<16x16xf32>, vector<16x5xf32> -> vector<16x26xf32>
    %41 = vector.extract_strided_slice %40 {offsets = [0, 0], sizes = [16, 16], strides = [1, 1]} : vector<16x26xf32> to vector<16x16xf32>
    %42 = vector.broadcast %20 : vector<1x16xf32> to vector<16x16xf32>
    %43 = arith.mulf %41, %42 : vector<16x16xf32>
    %44 = arith.truncf %43 : vector<16x16xf32> to vector<16x16xbf16>
    %45 = vector.extract_strided_slice %40 {offsets = [0, 1], sizes = [16, 16], strides = [1, 1]} : vector<16x26xf32> to vector<16x16xf32>
    %46 = arith.truncf %45 : vector<16x16xf32> to vector<16x16xbf16>
    %47 = vector.extract_strided_slice %40 {offsets = [0, 2], sizes = [16, 16], strides = [1, 1]} : vector<16x26xf32> to vector<16x16xf32>
    %48 = vector.broadcast %24 : vector<1x16xf32> to vector<16x16xf32>
    %49 = arith.mulf %47, %48 : vector<16x16xf32>
    %50 = arith.truncf %49 : vector<16x16xf32> to vector<16x16xbf16>
    %51 = vector.extract_strided_slice %40 {offsets = [0, 4], sizes = [16, 16], strides = [1, 1]} : vector<16x26xf32> to vector<16x16xf32>
    %52 = vector.broadcast %20 : vector<1x16xf32> to vector<16x16xf32>
    %53 = arith.mulf %51, %52 : vector<16x16xf32>
    %54 = arith.truncf %53 : vector<16x16xf32> to vector<16x16xbf16>
    %55 = vector.extract_strided_slice %40 {offsets = [0, 5], sizes = [16, 16], strides = [1, 1]} : vector<16x26xf32> to vector<16x16xf32>
    %56 = arith.truncf %55 : vector<16x16xf32> to vector<16x16xbf16>
    %57 = vector.extract_strided_slice %40 {offsets = [0, 6], sizes = [16, 16], strides = [1, 1]} : vector<16x26xf32> to vector<16x16xf32>
    %58 = vector.broadcast %24 : vector<1x16xf32> to vector<16x16xf32>
    %59 = arith.mulf %57, %58 : vector<16x16xf32>
    %60 = arith.truncf %59 : vector<16x16xf32> to vector<16x16xbf16>
    %61 = vector.extract_strided_slice %40 {offsets = [0, 8], sizes = [16, 16], strides = [1, 1]} : vector<16x26xf32> to vector<16x16xf32>
    %62 = vector.broadcast %20 : vector<1x16xf32> to vector<16x16xf32>
    %63 = arith.mulf %61, %62 : vector<16x16xf32>
    %64 = arith.truncf %63 : vector<16x16xf32> to vector<16x16xbf16>
    %65 = vector.extract_strided_slice %40 {offsets = [0, 9], sizes = [16, 16], strides = [1, 1]} : vector<16x26xf32> to vector<16x16xf32>
    %66 = arith.truncf %65 : vector<16x16xf32> to vector<16x16xbf16>
    %67 = vector.extract_strided_slice %40 {offsets = [0, 10], sizes = [16, 16], strides = [1, 1]} : vector<16x26xf32> to vector<16x16xf32>
    %68 = vector.broadcast %24 : vector<1x16xf32> to vector<16x16xf32>
    %69 = arith.mulf %67, %68 : vector<16x16xf32>
    %70 = arith.truncf %69 : vector<16x16xf32> to vector<16x16xbf16>
    %71 = tpu.concatenate %44, %46, %50, %54, %56, %60, %64, %66, %70 in 0 : vector<16x16xbf16>, vector<16x16xbf16>, vector<16x16xbf16>, vector<16x16xbf16>, vector<16x16xbf16>, vector<16x16xbf16>, vector<16x16xbf16>, vector<16x16xbf16>, vector<16x16xbf16> -> vector<144x16xbf16>
    %cst_17 = arith.constant dense<0.000000e+00> : vector<16x16xf32>
    %72 = tpu.matmul %38, %71, %cst_17 {dimension_numbers = #tpu.dot_dimension_numbers<[1], [0], [0], [1], [0, 0, 1, 1], [], []>} : vector<16x144xbf16>, vector<144x16xbf16>, vector<16x16xf32> -> vector<16x16xf32>
    %73 = vector.broadcast %39 : vector<16x1xf32> to vector<16x16xf32>
    %74 = arith.addf %72, %73 : vector<16x16xf32>
    %cst_18 = arith.constant 0.000000e+00 : f32
    %75 = vector.broadcast %cst_18 : f32 to vector<16x16xf32>
    %76 = arith.cmpf ogt, %74, %75 : vector<16x16xf32>
    %cst_19 = arith.constant 0.00999999977 : f32
    %77 = vector.broadcast %cst_19 : f32 to vector<16x16xf32>
    %78 = arith.mulf %77, %74 : vector<16x16xf32>
    %79 = arith.select %76, %74, %78 : vector<16x16xi1>, vector<16x16xf32>
    %c0_20 = arith.constant 0 : index
    %c0_21 = arith.constant 0 : index
    %c0_22 = arith.constant 0 : index
    %80 = vector.load %arg6[%c0_20, %c0_21, %c0_22] : memref<6x16x144xbf16, #tpu.memory_space<vmem>>, vector<1x16x144xbf16>
    %81 = vector.shape_cast %80 : vector<1x16x144xbf16> to vector<16x144xbf16>
    %c0_23 = arith.constant 0 : index
    %c0_24 = arith.constant 0 : index
    %c0_25 = arith.constant 0 : index
    %82 = vector.load %arg7[%c0_23, %c0_24, %c0_25] : memref<6x16x1xf32, #tpu.memory_space<vmem>>, vector<1x16x1xf32>
    %83 = vector.shape_cast %82 : vector<1x16x1xf32> to vector<16x1xf32>
    %84 = tpu.concatenate %25, %79, %25 in 1 : vector<16x5xf32>, vector<16x16xf32>, vector<16x5xf32> -> vector<16x26xf32>
    %85 = vector.extract_strided_slice %84 {offsets = [0, 0], sizes = [16, 16], strides = [1, 1]} : vector<16x26xf32> to vector<16x16xf32>
    %86 = vector.broadcast %20 : vector<1x16xf32> to vector<16x16xf32>
    %87 = arith.mulf %85, %86 : vector<16x16xf32>
    %88 = arith.truncf %87 : vector<16x16xf32> to vector<16x16xbf16>
    %89 = vector.extract_strided_slice %84 {offsets = [0, 1], sizes = [16, 16], strides = [1, 1]} : vector<16x26xf32> to vector<16x16xf32>
    %90 = arith.truncf %89 : vector<16x16xf32> to vector<16x16xbf16>
    %91 = vector.extract_strided_slice %84 {offsets = [0, 2], sizes = [16, 16], strides = [1, 1]} : vector<16x26xf32> to vector<16x16xf32>
    %92 = vector.broadcast %24 : vector<1x16xf32> to vector<16x16xf32>
    %93 = arith.mulf %91, %92 : vector<16x16xf32>
    %94 = arith.truncf %93 : vector<16x16xf32> to vector<16x16xbf16>
    %95 = vector.extract_strided_slice %84 {offsets = [0, 4], sizes = [16, 16], strides = [1, 1]} : vector<16x26xf32> to vector<16x16xf32>
    %96 = vector.broadcast %20 : vector<1x16xf32> to vector<16x16xf32>
    %97 = arith.mulf %95, %96 : vector<16x16xf32>
    %98 = arith.truncf %97 : vector<16x16xf32> to vector<16x16xbf16>
    %99 = vector.extract_strided_slice %84 {offsets = [0, 5], sizes = [16, 16], strides = [1, 1]} : vector<16x26xf32> to vector<16x16xf32>
    %100 = arith.truncf %99 : vector<16x16xf32> to vector<16x16xbf16>
    %101 = vector.extract_strided_slice %84 {offsets = [0, 6], sizes = [16, 16], strides = [1, 1]} : vector<16x26xf32> to vector<16x16xf32>
    %102 = vector.broadcast %24 : vector<1x16xf32> to vector<16x16xf32>
    %103 = arith.mulf %101, %102 : vector<16x16xf32>
    %104 = arith.truncf %103 : vector<16x16xf32> to vector<16x16xbf16>
    %105 = vector.extract_strided_slice %84 {offsets = [0, 8], sizes = [16, 16], strides = [1, 1]} : vector<16x26xf32> to vector<16x16xf32>
    %106 = vector.broadcast %20 : vector<1x16xf32> to vector<16x16xf32>
    %107 = arith.mulf %105, %106 : vector<16x16xf32>
    %108 = arith.truncf %107 : vector<16x16xf32> to vector<16x16xbf16>
    %109 = vector.extract_strided_slice %84 {offsets = [0, 9], sizes = [16, 16], strides = [1, 1]} : vector<16x26xf32> to vector<16x16xf32>
    %110 = arith.truncf %109 : vector<16x16xf32> to vector<16x16xbf16>
    %111 = vector.extract_strided_slice %84 {offsets = [0, 10], sizes = [16, 16], strides = [1, 1]} : vector<16x26xf32> to vector<16x16xf32>
    %112 = vector.broadcast %24 : vector<1x16xf32> to vector<16x16xf32>
    %113 = arith.mulf %111, %112 : vector<16x16xf32>
    %114 = arith.truncf %113 : vector<16x16xf32> to vector<16x16xbf16>
    %115 = tpu.concatenate %88, %90, %94, %98, %100, %104, %108, %110, %114 in 0 : vector<16x16xbf16>, vector<16x16xbf16>, vector<16x16xbf16>, vector<16x16xbf16>, vector<16x16xbf16>, vector<16x16xbf16>, vector<16x16xbf16>, vector<16x16xbf16>, vector<16x16xbf16> -> vector<144x16xbf16>
    %cst_26 = arith.constant dense<0.000000e+00> : vector<16x16xf32>
    %116 = tpu.matmul %81, %115, %cst_26 {dimension_numbers = #tpu.dot_dimension_numbers<[1], [0], [0], [1], [0, 0, 1, 1], [], []>} : vector<16x144xbf16>, vector<144x16xbf16>, vector<16x16xf32> -> vector<16x16xf32>
    %117 = vector.broadcast %83 : vector<16x1xf32> to vector<16x16xf32>
    %118 = arith.addf %116, %117 : vector<16x16xf32>
    %cst_27 = arith.constant 0.000000e+00 : f32
    %119 = vector.broadcast %cst_27 : f32 to vector<16x16xf32>
    %120 = arith.maximumf %118, %119 : vector<16x16xf32>
    %c0_28 = arith.constant 0 : index
    %c0_29 = arith.constant 0 : index
    %c0_30 = arith.constant 0 : index
    %121 = vector.load %arg8[%c0_28, %c0_29, %c0_30] : memref<6x16x16xbf16, #tpu.memory_space<vmem>>, vector<1x16x16xbf16>
    %122 = vector.shape_cast %121 : vector<1x16x16xbf16> to vector<16x16xbf16>
    %123 = arith.truncf %120 : vector<16x16xf32> to vector<16x16xbf16>
    %cst_31 = arith.constant dense<0.000000e+00> : vector<16x16xf32>
    %124 = tpu.matmul %122, %123, %cst_31 {dimension_numbers = #tpu.dot_dimension_numbers<[1], [0], [0], [1], [0, 0, 1, 1], [], []>} : vector<16x16xbf16>, vector<16x16xbf16>, vector<16x16xf32> -> vector<16x16xf32>
    %c0_32 = arith.constant 0 : index
    %c0_33 = arith.constant 0 : index
    %c0_34 = arith.constant 0 : index
    %125 = vector.load %arg9[%c0_32, %c0_33, %c0_34] : memref<6x16x1xf32, #tpu.memory_space<vmem>>, vector<1x16x1xf32>
    %126 = vector.shape_cast %125 : vector<1x16x1xf32> to vector<16x1xf32>
    %127 = vector.broadcast %126 : vector<16x1xf32> to vector<16x16xf32>
    %128 = arith.addf %124, %127 : vector<16x16xf32>
    %129 = arith.addf %128, %79 : vector<16x16xf32>
    %cst_35 = arith.constant 0.000000e+00 : f32
    %130 = vector.broadcast %cst_35 : f32 to vector<16x16xf32>
    %131 = arith.maximumf %129, %130 : vector<16x16xf32>
    %c1 = arith.constant 1 : index
    %c0_36 = arith.constant 0 : index
    %c0_37 = arith.constant 0 : index
    %132 = vector.load %arg6[%c1, %c0_36, %c0_37] : memref<6x16x144xbf16, #tpu.memory_space<vmem>>, vector<1x16x144xbf16>
    %133 = vector.shape_cast %132 : vector<1x16x144xbf16> to vector<16x144xbf16>
    %c1_38 = arith.constant 1 : index
    %c0_39 = arith.constant 0 : index
    %c0_40 = arith.constant 0 : index
    %134 = vector.load %arg7[%c1_38, %c0_39, %c0_40] : memref<6x16x1xf32, #tpu.memory_space<vmem>>, vector<1x16x1xf32>
    %135 = vector.shape_cast %134 : vector<1x16x1xf32> to vector<16x1xf32>
    %136 = tpu.concatenate %25, %131, %25 in 1 : vector<16x5xf32>, vector<16x16xf32>, vector<16x5xf32> -> vector<16x26xf32>
    %137 = vector.extract_strided_slice %136 {offsets = [0, 0], sizes = [16, 16], strides = [1, 1]} : vector<16x26xf32> to vector<16x16xf32>
    %138 = vector.broadcast %20 : vector<1x16xf32> to vector<16x16xf32>
    %139 = arith.mulf %137, %138 : vector<16x16xf32>
    %140 = arith.truncf %139 : vector<16x16xf32> to vector<16x16xbf16>
    %141 = vector.extract_strided_slice %136 {offsets = [0, 1], sizes = [16, 16], strides = [1, 1]} : vector<16x26xf32> to vector<16x16xf32>
    %142 = arith.truncf %141 : vector<16x16xf32> to vector<16x16xbf16>
    %143 = vector.extract_strided_slice %136 {offsets = [0, 2], sizes = [16, 16], strides = [1, 1]} : vector<16x26xf32> to vector<16x16xf32>
    %144 = vector.broadcast %24 : vector<1x16xf32> to vector<16x16xf32>
    %145 = arith.mulf %143, %144 : vector<16x16xf32>
    %146 = arith.truncf %145 : vector<16x16xf32> to vector<16x16xbf16>
    %147 = vector.extract_strided_slice %136 {offsets = [0, 4], sizes = [16, 16], strides = [1, 1]} : vector<16x26xf32> to vector<16x16xf32>
    %148 = vector.broadcast %20 : vector<1x16xf32> to vector<16x16xf32>
    %149 = arith.mulf %147, %148 : vector<16x16xf32>
    %150 = arith.truncf %149 : vector<16x16xf32> to vector<16x16xbf16>
    %151 = vector.extract_strided_slice %136 {offsets = [0, 5], sizes = [16, 16], strides = [1, 1]} : vector<16x26xf32> to vector<16x16xf32>
    %152 = arith.truncf %151 : vector<16x16xf32> to vector<16x16xbf16>
    %153 = vector.extract_strided_slice %136 {offsets = [0, 6], sizes = [16, 16], strides = [1, 1]} : vector<16x26xf32> to vector<16x16xf32>
    %154 = vector.broadcast %24 : vector<1x16xf32> to vector<16x16xf32>
    %155 = arith.mulf %153, %154 : vector<16x16xf32>
    %156 = arith.truncf %155 : vector<16x16xf32> to vector<16x16xbf16>
    %157 = vector.extract_strided_slice %136 {offsets = [0, 8], sizes = [16, 16], strides = [1, 1]} : vector<16x26xf32> to vector<16x16xf32>
    %158 = vector.broadcast %20 : vector<1x16xf32> to vector<16x16xf32>
    %159 = arith.mulf %157, %158 : vector<16x16xf32>
    %160 = arith.truncf %159 : vector<16x16xf32> to vector<16x16xbf16>
    %161 = vector.extract_strided_slice %136 {offsets = [0, 9], sizes = [16, 16], strides = [1, 1]} : vector<16x26xf32> to vector<16x16xf32>
    %162 = arith.truncf %161 : vector<16x16xf32> to vector<16x16xbf16>
    %163 = vector.extract_strided_slice %136 {offsets = [0, 10], sizes = [16, 16], strides = [1, 1]} : vector<16x26xf32> to vector<16x16xf32>
    %164 = vector.broadcast %24 : vector<1x16xf32> to vector<16x16xf32>
    %165 = arith.mulf %163, %164 : vector<16x16xf32>
    %166 = arith.truncf %165 : vector<16x16xf32> to vector<16x16xbf16>
    %167 = tpu.concatenate %140, %142, %146, %150, %152, %156, %160, %162, %166 in 0 : vector<16x16xbf16>, vector<16x16xbf16>, vector<16x16xbf16>, vector<16x16xbf16>, vector<16x16xbf16>, vector<16x16xbf16>, vector<16x16xbf16>, vector<16x16xbf16>, vector<16x16xbf16> -> vector<144x16xbf16>
    %cst_41 = arith.constant dense<0.000000e+00> : vector<16x16xf32>
    %168 = tpu.matmul %133, %167, %cst_41 {dimension_numbers = #tpu.dot_dimension_numbers<[1], [0], [0], [1], [0, 0, 1, 1], [], []>} : vector<16x144xbf16>, vector<144x16xbf16>, vector<16x16xf32> -> vector<16x16xf32>
    %169 = vector.broadcast %135 : vector<16x1xf32> to vector<16x16xf32>
    %170 = arith.addf %168, %169 : vector<16x16xf32>
    %cst_42 = arith.constant 0.000000e+00 : f32
    %171 = vector.broadcast %cst_42 : f32 to vector<16x16xf32>
    %172 = arith.maximumf %170, %171 : vector<16x16xf32>
    %c1_43 = arith.constant 1 : index
    %c0_44 = arith.constant 0 : index
    %c0_45 = arith.constant 0 : index
    %173 = vector.load %arg8[%c1_43, %c0_44, %c0_45] : memref<6x16x16xbf16, #tpu.memory_space<vmem>>, vector<1x16x16xbf16>
    %174 = vector.shape_cast %173 : vector<1x16x16xbf16> to vector<16x16xbf16>
    %175 = arith.truncf %172 : vector<16x16xf32> to vector<16x16xbf16>
    %cst_46 = arith.constant dense<0.000000e+00> : vector<16x16xf32>
    %176 = tpu.matmul %174, %175, %cst_46 {dimension_numbers = #tpu.dot_dimension_numbers<[1], [0], [0], [1], [0, 0, 1, 1], [], []>} : vector<16x16xbf16>, vector<16x16xbf16>, vector<16x16xf32> -> vector<16x16xf32>
    %c1_47 = arith.constant 1 : index
    %c0_48 = arith.constant 0 : index
    %c0_49 = arith.constant 0 : index
    %177 = vector.load %arg9[%c1_47, %c0_48, %c0_49] : memref<6x16x1xf32, #tpu.memory_space<vmem>>, vector<1x16x1xf32>
    %178 = vector.shape_cast %177 : vector<1x16x1xf32> to vector<16x1xf32>
    %179 = vector.broadcast %178 : vector<16x1xf32> to vector<16x16xf32>
    %180 = arith.addf %176, %179 : vector<16x16xf32>
    %181 = arith.addf %180, %131 : vector<16x16xf32>
    %cst_50 = arith.constant 0.000000e+00 : f32
    %182 = vector.broadcast %cst_50 : f32 to vector<16x16xf32>
    %183 = arith.maximumf %181, %182 : vector<16x16xf32>
    %c2 = arith.constant 2 : index
    %c0_51 = arith.constant 0 : index
    %c0_52 = arith.constant 0 : index
    %184 = vector.load %arg6[%c2, %c0_51, %c0_52] : memref<6x16x144xbf16, #tpu.memory_space<vmem>>, vector<1x16x144xbf16>
    %185 = vector.shape_cast %184 : vector<1x16x144xbf16> to vector<16x144xbf16>
    %c2_53 = arith.constant 2 : index
    %c0_54 = arith.constant 0 : index
    %c0_55 = arith.constant 0 : index
    %186 = vector.load %arg7[%c2_53, %c0_54, %c0_55] : memref<6x16x1xf32, #tpu.memory_space<vmem>>, vector<1x16x1xf32>
    %187 = vector.shape_cast %186 : vector<1x16x1xf32> to vector<16x1xf32>
    %188 = tpu.concatenate %25, %183, %25 in 1 : vector<16x5xf32>, vector<16x16xf32>, vector<16x5xf32> -> vector<16x26xf32>
    %189 = vector.extract_strided_slice %188 {offsets = [0, 0], sizes = [16, 16], strides = [1, 1]} : vector<16x26xf32> to vector<16x16xf32>
    %190 = vector.broadcast %20 : vector<1x16xf32> to vector<16x16xf32>
    %191 = arith.mulf %189, %190 : vector<16x16xf32>
    %192 = arith.truncf %191 : vector<16x16xf32> to vector<16x16xbf16>
    %193 = vector.extract_strided_slice %188 {offsets = [0, 1], sizes = [16, 16], strides = [1, 1]} : vector<16x26xf32> to vector<16x16xf32>
    %194 = arith.truncf %193 : vector<16x16xf32> to vector<16x16xbf16>
    %195 = vector.extract_strided_slice %188 {offsets = [0, 2], sizes = [16, 16], strides = [1, 1]} : vector<16x26xf32> to vector<16x16xf32>
    %196 = vector.broadcast %24 : vector<1x16xf32> to vector<16x16xf32>
    %197 = arith.mulf %195, %196 : vector<16x16xf32>
    %198 = arith.truncf %197 : vector<16x16xf32> to vector<16x16xbf16>
    %199 = vector.extract_strided_slice %188 {offsets = [0, 4], sizes = [16, 16], strides = [1, 1]} : vector<16x26xf32> to vector<16x16xf32>
    %200 = vector.broadcast %20 : vector<1x16xf32> to vector<16x16xf32>
    %201 = arith.mulf %199, %200 : vector<16x16xf32>
    %202 = arith.truncf %201 : vector<16x16xf32> to vector<16x16xbf16>
    %203 = vector.extract_strided_slice %188 {offsets = [0, 5], sizes = [16, 16], strides = [1, 1]} : vector<16x26xf32> to vector<16x16xf32>
    %204 = arith.truncf %203 : vector<16x16xf32> to vector<16x16xbf16>
    %205 = vector.extract_strided_slice %188 {offsets = [0, 6], sizes = [16, 16], strides = [1, 1]} : vector<16x26xf32> to vector<16x16xf32>
    %206 = vector.broadcast %24 : vector<1x16xf32> to vector<16x16xf32>
    %207 = arith.mulf %205, %206 : vector<16x16xf32>
    %208 = arith.truncf %207 : vector<16x16xf32> to vector<16x16xbf16>
    %209 = vector.extract_strided_slice %188 {offsets = [0, 8], sizes = [16, 16], strides = [1, 1]} : vector<16x26xf32> to vector<16x16xf32>
    %210 = vector.broadcast %20 : vector<1x16xf32> to vector<16x16xf32>
    %211 = arith.mulf %209, %210 : vector<16x16xf32>
    %212 = arith.truncf %211 : vector<16x16xf32> to vector<16x16xbf16>
    %213 = vector.extract_strided_slice %188 {offsets = [0, 9], sizes = [16, 16], strides = [1, 1]} : vector<16x26xf32> to vector<16x16xf32>
    %214 = arith.truncf %213 : vector<16x16xf32> to vector<16x16xbf16>
    %215 = vector.extract_strided_slice %188 {offsets = [0, 10], sizes = [16, 16], strides = [1, 1]} : vector<16x26xf32> to vector<16x16xf32>
    %216 = vector.broadcast %24 : vector<1x16xf32> to vector<16x16xf32>
    %217 = arith.mulf %215, %216 : vector<16x16xf32>
    %218 = arith.truncf %217 : vector<16x16xf32> to vector<16x16xbf16>
    %219 = tpu.concatenate %192, %194, %198, %202, %204, %208, %212, %214, %218 in 0 : vector<16x16xbf16>, vector<16x16xbf16>, vector<16x16xbf16>, vector<16x16xbf16>, vector<16x16xbf16>, vector<16x16xbf16>, vector<16x16xbf16>, vector<16x16xbf16>, vector<16x16xbf16> -> vector<144x16xbf16>
    %cst_56 = arith.constant dense<0.000000e+00> : vector<16x16xf32>
    %220 = tpu.matmul %185, %219, %cst_56 {dimension_numbers = #tpu.dot_dimension_numbers<[1], [0], [0], [1], [0, 0, 1, 1], [], []>} : vector<16x144xbf16>, vector<144x16xbf16>, vector<16x16xf32> -> vector<16x16xf32>
    %221 = vector.broadcast %187 : vector<16x1xf32> to vector<16x16xf32>
    %222 = arith.addf %220, %221 : vector<16x16xf32>
    %cst_57 = arith.constant 0.000000e+00 : f32
    %223 = vector.broadcast %cst_57 : f32 to vector<16x16xf32>
    %224 = arith.maximumf %222, %223 : vector<16x16xf32>
    %c2_58 = arith.constant 2 : index
    %c0_59 = arith.constant 0 : index
    %c0_60 = arith.constant 0 : index
    %225 = vector.load %arg8[%c2_58, %c0_59, %c0_60] : memref<6x16x16xbf16, #tpu.memory_space<vmem>>, vector<1x16x16xbf16>
    %226 = vector.shape_cast %225 : vector<1x16x16xbf16> to vector<16x16xbf16>
    %227 = arith.truncf %224 : vector<16x16xf32> to vector<16x16xbf16>
    %cst_61 = arith.constant dense<0.000000e+00> : vector<16x16xf32>
    %228 = tpu.matmul %226, %227, %cst_61 {dimension_numbers = #tpu.dot_dimension_numbers<[1], [0], [0], [1], [0, 0, 1, 1], [], []>} : vector<16x16xbf16>, vector<16x16xbf16>, vector<16x16xf32> -> vector<16x16xf32>
    %c2_62 = arith.constant 2 : index
    %c0_63 = arith.constant 0 : index
    %c0_64 = arith.constant 0 : index
    %229 = vector.load %arg9[%c2_62, %c0_63, %c0_64] : memref<6x16x1xf32, #tpu.memory_space<vmem>>, vector<1x16x1xf32>
    %230 = vector.shape_cast %229 : vector<1x16x1xf32> to vector<16x1xf32>
    %231 = vector.broadcast %230 : vector<16x1xf32> to vector<16x16xf32>
    %232 = arith.addf %228, %231 : vector<16x16xf32>
    %233 = arith.addf %232, %183 : vector<16x16xf32>
    %cst_65 = arith.constant 0.000000e+00 : f32
    %234 = vector.broadcast %cst_65 : f32 to vector<16x16xf32>
    %235 = arith.maximumf %233, %234 : vector<16x16xf32>
    %c3 = arith.constant 3 : index
    %c0_66 = arith.constant 0 : index
    %c0_67 = arith.constant 0 : index
    %236 = vector.load %arg6[%c3, %c0_66, %c0_67] : memref<6x16x144xbf16, #tpu.memory_space<vmem>>, vector<1x16x144xbf16>
    %237 = vector.shape_cast %236 : vector<1x16x144xbf16> to vector<16x144xbf16>
    %c3_68 = arith.constant 3 : index
    %c0_69 = arith.constant 0 : index
    %c0_70 = arith.constant 0 : index
    %238 = vector.load %arg7[%c3_68, %c0_69, %c0_70] : memref<6x16x1xf32, #tpu.memory_space<vmem>>, vector<1x16x1xf32>
    %239 = vector.shape_cast %238 : vector<1x16x1xf32> to vector<16x1xf32>
    %240 = tpu.concatenate %25, %235, %25 in 1 : vector<16x5xf32>, vector<16x16xf32>, vector<16x5xf32> -> vector<16x26xf32>
    %241 = vector.extract_strided_slice %240 {offsets = [0, 0], sizes = [16, 16], strides = [1, 1]} : vector<16x26xf32> to vector<16x16xf32>
    %242 = vector.broadcast %20 : vector<1x16xf32> to vector<16x16xf32>
    %243 = arith.mulf %241, %242 : vector<16x16xf32>
    %244 = arith.truncf %243 : vector<16x16xf32> to vector<16x16xbf16>
    %245 = vector.extract_strided_slice %240 {offsets = [0, 1], sizes = [16, 16], strides = [1, 1]} : vector<16x26xf32> to vector<16x16xf32>
    %246 = arith.truncf %245 : vector<16x16xf32> to vector<16x16xbf16>
    %247 = vector.extract_strided_slice %240 {offsets = [0, 2], sizes = [16, 16], strides = [1, 1]} : vector<16x26xf32> to vector<16x16xf32>
    %248 = vector.broadcast %24 : vector<1x16xf32> to vector<16x16xf32>
    %249 = arith.mulf %247, %248 : vector<16x16xf32>
    %250 = arith.truncf %249 : vector<16x16xf32> to vector<16x16xbf16>
    %251 = vector.extract_strided_slice %240 {offsets = [0, 4], sizes = [16, 16], strides = [1, 1]} : vector<16x26xf32> to vector<16x16xf32>
    %252 = vector.broadcast %20 : vector<1x16xf32> to vector<16x16xf32>
    %253 = arith.mulf %251, %252 : vector<16x16xf32>
    %254 = arith.truncf %253 : vector<16x16xf32> to vector<16x16xbf16>
    %255 = vector.extract_strided_slice %240 {offsets = [0, 5], sizes = [16, 16], strides = [1, 1]} : vector<16x26xf32> to vector<16x16xf32>
    %256 = arith.truncf %255 : vector<16x16xf32> to vector<16x16xbf16>
    %257 = vector.extract_strided_slice %240 {offsets = [0, 6], sizes = [16, 16], strides = [1, 1]} : vector<16x26xf32> to vector<16x16xf32>
    %258 = vector.broadcast %24 : vector<1x16xf32> to vector<16x16xf32>
    %259 = arith.mulf %257, %258 : vector<16x16xf32>
    %260 = arith.truncf %259 : vector<16x16xf32> to vector<16x16xbf16>
    %261 = vector.extract_strided_slice %240 {offsets = [0, 8], sizes = [16, 16], strides = [1, 1]} : vector<16x26xf32> to vector<16x16xf32>
    %262 = vector.broadcast %20 : vector<1x16xf32> to vector<16x16xf32>
    %263 = arith.mulf %261, %262 : vector<16x16xf32>
    %264 = arith.truncf %263 : vector<16x16xf32> to vector<16x16xbf16>
    %265 = vector.extract_strided_slice %240 {offsets = [0, 9], sizes = [16, 16], strides = [1, 1]} : vector<16x26xf32> to vector<16x16xf32>
    %266 = arith.truncf %265 : vector<16x16xf32> to vector<16x16xbf16>
    %267 = vector.extract_strided_slice %240 {offsets = [0, 10], sizes = [16, 16], strides = [1, 1]} : vector<16x26xf32> to vector<16x16xf32>
    %268 = vector.broadcast %24 : vector<1x16xf32> to vector<16x16xf32>
    %269 = arith.mulf %267, %268 : vector<16x16xf32>
    %270 = arith.truncf %269 : vector<16x16xf32> to vector<16x16xbf16>
    %271 = tpu.concatenate %244, %246, %250, %254, %256, %260, %264, %266, %270 in 0 : vector<16x16xbf16>, vector<16x16xbf16>, vector<16x16xbf16>, vector<16x16xbf16>, vector<16x16xbf16>, vector<16x16xbf16>, vector<16x16xbf16>, vector<16x16xbf16>, vector<16x16xbf16> -> vector<144x16xbf16>
    %cst_71 = arith.constant dense<0.000000e+00> : vector<16x16xf32>
    %272 = tpu.matmul %237, %271, %cst_71 {dimension_numbers = #tpu.dot_dimension_numbers<[1], [0], [0], [1], [0, 0, 1, 1], [], []>} : vector<16x144xbf16>, vector<144x16xbf16>, vector<16x16xf32> -> vector<16x16xf32>
    %273 = vector.broadcast %239 : vector<16x1xf32> to vector<16x16xf32>
    %274 = arith.addf %272, %273 : vector<16x16xf32>
    %cst_72 = arith.constant 0.000000e+00 : f32
    %275 = vector.broadcast %cst_72 : f32 to vector<16x16xf32>
    %276 = arith.maximumf %274, %275 : vector<16x16xf32>
    %c3_73 = arith.constant 3 : index
    %c0_74 = arith.constant 0 : index
    %c0_75 = arith.constant 0 : index
    %277 = vector.load %arg8[%c3_73, %c0_74, %c0_75] : memref<6x16x16xbf16, #tpu.memory_space<vmem>>, vector<1x16x16xbf16>
    %278 = vector.shape_cast %277 : vector<1x16x16xbf16> to vector<16x16xbf16>
    %279 = arith.truncf %276 : vector<16x16xf32> to vector<16x16xbf16>
    %cst_76 = arith.constant dense<0.000000e+00> : vector<16x16xf32>
    %280 = tpu.matmul %278, %279, %cst_76 {dimension_numbers = #tpu.dot_dimension_numbers<[1], [0], [0], [1], [0, 0, 1, 1], [], []>} : vector<16x16xbf16>, vector<16x16xbf16>, vector<16x16xf32> -> vector<16x16xf32>
    %c3_77 = arith.constant 3 : index
    %c0_78 = arith.constant 0 : index
    %c0_79 = arith.constant 0 : index
    %281 = vector.load %arg9[%c3_77, %c0_78, %c0_79] : memref<6x16x1xf32, #tpu.memory_space<vmem>>, vector<1x16x1xf32>
    %282 = vector.shape_cast %281 : vector<1x16x1xf32> to vector<16x1xf32>
    %283 = vector.broadcast %282 : vector<16x1xf32> to vector<16x16xf32>
    %284 = arith.addf %280, %283 : vector<16x16xf32>
    %285 = arith.addf %284, %235 : vector<16x16xf32>
    %cst_80 = arith.constant 0.000000e+00 : f32
    %286 = vector.broadcast %cst_80 : f32 to vector<16x16xf32>
    %287 = arith.maximumf %285, %286 : vector<16x16xf32>
    %c4 = arith.constant 4 : index
    %c0_81 = arith.constant 0 : index
    %c0_82 = arith.constant 0 : index
    %288 = vector.load %arg6[%c4, %c0_81, %c0_82] : memref<6x16x144xbf16, #tpu.memory_space<vmem>>, vector<1x16x144xbf16>
    %289 = vector.shape_cast %288 : vector<1x16x144xbf16> to vector<16x144xbf16>
    %c4_83 = arith.constant 4 : index
    %c0_84 = arith.constant 0 : index
    %c0_85 = arith.constant 0 : index
    %290 = vector.load %arg7[%c4_83, %c0_84, %c0_85] : memref<6x16x1xf32, #tpu.memory_space<vmem>>, vector<1x16x1xf32>
    %291 = vector.shape_cast %290 : vector<1x16x1xf32> to vector<16x1xf32>
    %292 = tpu.concatenate %25, %287, %25 in 1 : vector<16x5xf32>, vector<16x16xf32>, vector<16x5xf32> -> vector<16x26xf32>
    %293 = vector.extract_strided_slice %292 {offsets = [0, 0], sizes = [16, 16], strides = [1, 1]} : vector<16x26xf32> to vector<16x16xf32>
    %294 = vector.broadcast %20 : vector<1x16xf32> to vector<16x16xf32>
    %295 = arith.mulf %293, %294 : vector<16x16xf32>
    %296 = arith.truncf %295 : vector<16x16xf32> to vector<16x16xbf16>
    %297 = vector.extract_strided_slice %292 {offsets = [0, 1], sizes = [16, 16], strides = [1, 1]} : vector<16x26xf32> to vector<16x16xf32>
    %298 = arith.truncf %297 : vector<16x16xf32> to vector<16x16xbf16>
    %299 = vector.extract_strided_slice %292 {offsets = [0, 2], sizes = [16, 16], strides = [1, 1]} : vector<16x26xf32> to vector<16x16xf32>
    %300 = vector.broadcast %24 : vector<1x16xf32> to vector<16x16xf32>
    %301 = arith.mulf %299, %300 : vector<16x16xf32>
    %302 = arith.truncf %301 : vector<16x16xf32> to vector<16x16xbf16>
    %303 = vector.extract_strided_slice %292 {offsets = [0, 4], sizes = [16, 16], strides = [1, 1]} : vector<16x26xf32> to vector<16x16xf32>
    %304 = vector.broadcast %20 : vector<1x16xf32> to vector<16x16xf32>
    %305 = arith.mulf %303, %304 : vector<16x16xf32>
    %306 = arith.truncf %305 : vector<16x16xf32> to vector<16x16xbf16>
    %307 = vector.extract_strided_slice %292 {offsets = [0, 5], sizes = [16, 16], strides = [1, 1]} : vector<16x26xf32> to vector<16x16xf32>
    %308 = arith.truncf %307 : vector<16x16xf32> to vector<16x16xbf16>
    %309 = vector.extract_strided_slice %292 {offsets = [0, 6], sizes = [16, 16], strides = [1, 1]} : vector<16x26xf32> to vector<16x16xf32>
    %310 = vector.broadcast %24 : vector<1x16xf32> to vector<16x16xf32>
    %311 = arith.mulf %309, %310 : vector<16x16xf32>
    %312 = arith.truncf %311 : vector<16x16xf32> to vector<16x16xbf16>
    %313 = vector.extract_strided_slice %292 {offsets = [0, 8], sizes = [16, 16], strides = [1, 1]} : vector<16x26xf32> to vector<16x16xf32>
    %314 = vector.broadcast %20 : vector<1x16xf32> to vector<16x16xf32>
    %315 = arith.mulf %313, %314 : vector<16x16xf32>
    %316 = arith.truncf %315 : vector<16x16xf32> to vector<16x16xbf16>
    %317 = vector.extract_strided_slice %292 {offsets = [0, 9], sizes = [16, 16], strides = [1, 1]} : vector<16x26xf32> to vector<16x16xf32>
    %318 = arith.truncf %317 : vector<16x16xf32> to vector<16x16xbf16>
    %319 = vector.extract_strided_slice %292 {offsets = [0, 10], sizes = [16, 16], strides = [1, 1]} : vector<16x26xf32> to vector<16x16xf32>
    %320 = vector.broadcast %24 : vector<1x16xf32> to vector<16x16xf32>
    %321 = arith.mulf %319, %320 : vector<16x16xf32>
    %322 = arith.truncf %321 : vector<16x16xf32> to vector<16x16xbf16>
    %323 = tpu.concatenate %296, %298, %302, %306, %308, %312, %316, %318, %322 in 0 : vector<16x16xbf16>, vector<16x16xbf16>, vector<16x16xbf16>, vector<16x16xbf16>, vector<16x16xbf16>, vector<16x16xbf16>, vector<16x16xbf16>, vector<16x16xbf16>, vector<16x16xbf16> -> vector<144x16xbf16>
    %cst_86 = arith.constant dense<0.000000e+00> : vector<16x16xf32>
    %324 = tpu.matmul %289, %323, %cst_86 {dimension_numbers = #tpu.dot_dimension_numbers<[1], [0], [0], [1], [0, 0, 1, 1], [], []>} : vector<16x144xbf16>, vector<144x16xbf16>, vector<16x16xf32> -> vector<16x16xf32>
    %325 = vector.broadcast %291 : vector<16x1xf32> to vector<16x16xf32>
    %326 = arith.addf %324, %325 : vector<16x16xf32>
    %cst_87 = arith.constant 0.000000e+00 : f32
    %327 = vector.broadcast %cst_87 : f32 to vector<16x16xf32>
    %328 = arith.maximumf %326, %327 : vector<16x16xf32>
    %c4_88 = arith.constant 4 : index
    %c0_89 = arith.constant 0 : index
    %c0_90 = arith.constant 0 : index
    %329 = vector.load %arg8[%c4_88, %c0_89, %c0_90] : memref<6x16x16xbf16, #tpu.memory_space<vmem>>, vector<1x16x16xbf16>
    %330 = vector.shape_cast %329 : vector<1x16x16xbf16> to vector<16x16xbf16>
    %331 = arith.truncf %328 : vector<16x16xf32> to vector<16x16xbf16>
    %cst_91 = arith.constant dense<0.000000e+00> : vector<16x16xf32>
    %332 = tpu.matmul %330, %331, %cst_91 {dimension_numbers = #tpu.dot_dimension_numbers<[1], [0], [0], [1], [0, 0, 1, 1], [], []>} : vector<16x16xbf16>, vector<16x16xbf16>, vector<16x16xf32> -> vector<16x16xf32>
    %c4_92 = arith.constant 4 : index
    %c0_93 = arith.constant 0 : index
    %c0_94 = arith.constant 0 : index
    %333 = vector.load %arg9[%c4_92, %c0_93, %c0_94] : memref<6x16x1xf32, #tpu.memory_space<vmem>>, vector<1x16x1xf32>
    %334 = vector.shape_cast %333 : vector<1x16x1xf32> to vector<16x1xf32>
    %335 = vector.broadcast %334 : vector<16x1xf32> to vector<16x16xf32>
    %336 = arith.addf %332, %335 : vector<16x16xf32>
    %337 = arith.addf %336, %287 : vector<16x16xf32>
    %cst_95 = arith.constant 0.000000e+00 : f32
    %338 = vector.broadcast %cst_95 : f32 to vector<16x16xf32>
    %339 = arith.maximumf %337, %338 : vector<16x16xf32>
    %c5 = arith.constant 5 : index
    %c0_96 = arith.constant 0 : index
    %c0_97 = arith.constant 0 : index
    %340 = vector.load %arg6[%c5, %c0_96, %c0_97] : memref<6x16x144xbf16, #tpu.memory_space<vmem>>, vector<1x16x144xbf16>
    %341 = vector.shape_cast %340 : vector<1x16x144xbf16> to vector<16x144xbf16>
    %c5_98 = arith.constant 5 : index
    %c0_99 = arith.constant 0 : index
    %c0_100 = arith.constant 0 : index
    %342 = vector.load %arg7[%c5_98, %c0_99, %c0_100] : memref<6x16x1xf32, #tpu.memory_space<vmem>>, vector<1x16x1xf32>
    %343 = vector.shape_cast %342 : vector<1x16x1xf32> to vector<16x1xf32>
    %344 = tpu.concatenate %25, %339, %25 in 1 : vector<16x5xf32>, vector<16x16xf32>, vector<16x5xf32> -> vector<16x26xf32>
    %345 = vector.extract_strided_slice %344 {offsets = [0, 0], sizes = [16, 16], strides = [1, 1]} : vector<16x26xf32> to vector<16x16xf32>
    %346 = vector.broadcast %20 : vector<1x16xf32> to vector<16x16xf32>
    %347 = arith.mulf %345, %346 : vector<16x16xf32>
    %348 = arith.truncf %347 : vector<16x16xf32> to vector<16x16xbf16>
    %349 = vector.extract_strided_slice %344 {offsets = [0, 1], sizes = [16, 16], strides = [1, 1]} : vector<16x26xf32> to vector<16x16xf32>
    %350 = arith.truncf %349 : vector<16x16xf32> to vector<16x16xbf16>
    %351 = vector.extract_strided_slice %344 {offsets = [0, 2], sizes = [16, 16], strides = [1, 1]} : vector<16x26xf32> to vector<16x16xf32>
    %352 = vector.broadcast %24 : vector<1x16xf32> to vector<16x16xf32>
    %353 = arith.mulf %351, %352 : vector<16x16xf32>
    %354 = arith.truncf %353 : vector<16x16xf32> to vector<16x16xbf16>
    %355 = vector.extract_strided_slice %344 {offsets = [0, 4], sizes = [16, 16], strides = [1, 1]} : vector<16x26xf32> to vector<16x16xf32>
    %356 = vector.broadcast %20 : vector<1x16xf32> to vector<16x16xf32>
    %357 = arith.mulf %355, %356 : vector<16x16xf32>
    %358 = arith.truncf %357 : vector<16x16xf32> to vector<16x16xbf16>
    %359 = vector.extract_strided_slice %344 {offsets = [0, 5], sizes = [16, 16], strides = [1, 1]} : vector<16x26xf32> to vector<16x16xf32>
    %360 = arith.truncf %359 : vector<16x16xf32> to vector<16x16xbf16>
    %361 = vector.extract_strided_slice %344 {offsets = [0, 6], sizes = [16, 16], strides = [1, 1]} : vector<16x26xf32> to vector<16x16xf32>
    %362 = vector.broadcast %24 : vector<1x16xf32> to vector<16x16xf32>
    %363 = arith.mulf %361, %362 : vector<16x16xf32>
    %364 = arith.truncf %363 : vector<16x16xf32> to vector<16x16xbf16>
    %365 = vector.extract_strided_slice %344 {offsets = [0, 8], sizes = [16, 16], strides = [1, 1]} : vector<16x26xf32> to vector<16x16xf32>
    %366 = vector.broadcast %20 : vector<1x16xf32> to vector<16x16xf32>
    %367 = arith.mulf %365, %366 : vector<16x16xf32>
    %368 = arith.truncf %367 : vector<16x16xf32> to vector<16x16xbf16>
    %369 = vector.extract_strided_slice %344 {offsets = [0, 9], sizes = [16, 16], strides = [1, 1]} : vector<16x26xf32> to vector<16x16xf32>
    %370 = arith.truncf %369 : vector<16x16xf32> to vector<16x16xbf16>
    %371 = vector.extract_strided_slice %344 {offsets = [0, 10], sizes = [16, 16], strides = [1, 1]} : vector<16x26xf32> to vector<16x16xf32>
    %372 = vector.broadcast %24 : vector<1x16xf32> to vector<16x16xf32>
    %373 = arith.mulf %371, %372 : vector<16x16xf32>
    %374 = arith.truncf %373 : vector<16x16xf32> to vector<16x16xbf16>
    %375 = tpu.concatenate %348, %350, %354, %358, %360, %364, %368, %370, %374 in 0 : vector<16x16xbf16>, vector<16x16xbf16>, vector<16x16xbf16>, vector<16x16xbf16>, vector<16x16xbf16>, vector<16x16xbf16>, vector<16x16xbf16>, vector<16x16xbf16>, vector<16x16xbf16> -> vector<144x16xbf16>
    %cst_101 = arith.constant dense<0.000000e+00> : vector<16x16xf32>
    %376 = tpu.matmul %341, %375, %cst_101 {dimension_numbers = #tpu.dot_dimension_numbers<[1], [0], [0], [1], [0, 0, 1, 1], [], []>} : vector<16x144xbf16>, vector<144x16xbf16>, vector<16x16xf32> -> vector<16x16xf32>
    %377 = vector.broadcast %343 : vector<16x1xf32> to vector<16x16xf32>
    %378 = arith.addf %376, %377 : vector<16x16xf32>
    %cst_102 = arith.constant 0.000000e+00 : f32
    %379 = vector.broadcast %cst_102 : f32 to vector<16x16xf32>
    %380 = arith.maximumf %378, %379 : vector<16x16xf32>
    %c5_103 = arith.constant 5 : index
    %c0_104 = arith.constant 0 : index
    %c0_105 = arith.constant 0 : index
    %381 = vector.load %arg8[%c5_103, %c0_104, %c0_105] : memref<6x16x16xbf16, #tpu.memory_space<vmem>>, vector<1x16x16xbf16>
    %382 = vector.shape_cast %381 : vector<1x16x16xbf16> to vector<16x16xbf16>
    %383 = arith.truncf %380 : vector<16x16xf32> to vector<16x16xbf16>
    %cst_106 = arith.constant dense<0.000000e+00> : vector<16x16xf32>
    %384 = tpu.matmul %382, %383, %cst_106 {dimension_numbers = #tpu.dot_dimension_numbers<[1], [0], [0], [1], [0, 0, 1, 1], [], []>} : vector<16x16xbf16>, vector<16x16xbf16>, vector<16x16xf32> -> vector<16x16xf32>
    %c5_107 = arith.constant 5 : index
    %c0_108 = arith.constant 0 : index
    %c0_109 = arith.constant 0 : index
    %385 = vector.load %arg9[%c5_107, %c0_108, %c0_109] : memref<6x16x1xf32, #tpu.memory_space<vmem>>, vector<1x16x1xf32>
    %386 = vector.shape_cast %385 : vector<1x16x1xf32> to vector<16x1xf32>
    %387 = vector.broadcast %386 : vector<16x1xf32> to vector<16x16xf32>
    %388 = arith.addf %384, %387 : vector<16x16xf32>
    %389 = arith.addf %388, %339 : vector<16x16xf32>
    %cst_110 = arith.constant 0.000000e+00 : f32
    %390 = vector.broadcast %cst_110 : f32 to vector<16x16xf32>
    %391 = arith.maximumf %389, %390 : vector<16x16xf32>
    %cst_111 = arith.constant 0.000000e+00 : f32
    %392 = vector.broadcast %cst_111 : f32 to vector<16x16xf32>
    %393 = arith.cmpf ogt, %391, %392 : vector<16x16xf32>
    %cst_112 = arith.constant 0.00999999977 : f32
    %394 = vector.broadcast %cst_112 : f32 to vector<16x16xf32>
    %395 = arith.mulf %394, %391 : vector<16x16xf32>
    %396 = arith.select %393, %391, %395 : vector<16x16xi1>, vector<16x16xf32>
    %c0_113 = arith.constant 0 : index
    %c0_114 = arith.constant 0 : index
    %397 = vector.load %arg10[%c0_113, %c0_114] : memref<16x16xbf16, #tpu.memory_space<vmem>>, vector<16x16xbf16>
    %398 = arith.truncf %396 : vector<16x16xf32> to vector<16x16xbf16>
    %cst_115 = arith.constant dense<0.000000e+00> : vector<16x16xf32>
    %399 = tpu.matmul %397, %398, %cst_115 {dimension_numbers = #tpu.dot_dimension_numbers<[1], [0], [0], [1], [0, 0, 1, 1], [], []>} : vector<16x16xbf16>, vector<16x16xbf16>, vector<16x16xf32> -> vector<16x16xf32>
    %c0_116 = arith.constant 0 : index
    %c0_117 = arith.constant 0 : index
    %400 = vector.load %arg11[%c0_116, %c0_117] : memref<16x1xf32, #tpu.memory_space<vmem>>, vector<16x1xf32>
    %401 = vector.broadcast %400 : vector<16x1xf32> to vector<16x16xf32>
    %402 = arith.addf %399, %401 : vector<16x16xf32>
    %cst_118 = arith.constant 0.000000e+00 : f32
    %403 = vector.broadcast %cst_118 : f32 to vector<16x16xf32>
    %404 = arith.cmpf ogt, %402, %403 : vector<16x16xf32>
    %cst_119 = arith.constant 0.00999999977 : f32
    %405 = vector.broadcast %cst_119 : f32 to vector<16x16xf32>
    %406 = arith.mulf %405, %402 : vector<16x16xf32>
    %407 = arith.select %404, %402, %406 : vector<16x16xi1>, vector<16x16xf32>
    %c0_120 = arith.constant 0 : index
    %c0_121 = arith.constant 0 : index
    %c0_122 = arith.constant 0 : index
    %408 = vector.load %arg12[%c0_120, %c0_121, %c0_122] : memref<1x16x16xf32, #tpu.memory_space<vmem>>, vector<1x16x16xf32>
    %409 = vector.shape_cast %408 : vector<1x16x16xf32> to vector<16x16xf32>
    %410 = vector.shape_cast %407 : vector<16x16xf32> to vector<1x16x16xf32>
    tpu.vector_store %arg12[%c0_120, %c0_121, %c0_122], %410 {strides = array<i32>} : memref<1x16x16xf32, #tpu.memory_space<vmem>>, vector<1x16x16xf32>,
    return
  }
  func.func @transform_0(%arg0: i32) -> (i32, i32, i32) {
    %c0_i32 = arith.constant 0 : i32
    %c0_i32_0 = arith.constant 0 : i32
    %c0_i32_1 = arith.constant 0 : i32
    return %arg0, %c0_i32, %c0_i32_0 : i32, i32, i32
  }
  func.func @transform_1(%arg0: i32) -> (i32, i32) {
    %c0_i32 = arith.constant 0 : i32
    %c0_i32_0 = arith.constant 0 : i32
    %c0_i32_1 = arith.constant 0 : i32
    return %c0_i32, %c0_i32_0 : i32, i32
  }
  func.func @transform_2(%arg0: i32) -> (i32, i32) {
    %c0_i32 = arith.constant 0 : i32
    %c0_i32_0 = arith.constant 0 : i32
    %c0_i32_1 = arith.constant 0 : i32
    return %c0_i32, %c0_i32_0 : i32, i32
  }
  func.func @transform_3(%arg0: i32) -> (i32, i32) {
    %c0_i32 = arith.constant 0 : i32
    %c0_i32_0 = arith.constant 0 : i32
    %c0_i32_1 = arith.constant 0 : i32
    return %c0_i32, %c0_i32_0 : i32, i32
  }
  func.func @transform_4(%arg0: i32) -> (i32, i32) {
    %c0_i32 = arith.constant 0 : i32
    %c0_i32_0 = arith.constant 0 : i32
    %c0_i32_1 = arith.constant 0 : i32
    return %c0_i32, %c0_i32_0 : i32, i32
  }
  func.func @transform_5(%arg0: i32) -> (i32, i32, i32) {
    %c0_i32 = arith.constant 0 : i32
    %c0_i32_0 = arith.constant 0 : i32
    %c0_i32_1 = arith.constant 0 : i32
    %c0_i32_2 = arith.constant 0 : i32
    return %c0_i32, %c0_i32_0, %c0_i32_1 : i32, i32, i32
  }
  func.func @transform_6(%arg0: i32) -> (i32, i32, i32) {
    %c0_i32 = arith.constant 0 : i32
    %c0_i32_0 = arith.constant 0 : i32
    %c0_i32_1 = arith.constant 0 : i32
    %c0_i32_2 = arith.constant 0 : i32
    return %c0_i32, %c0_i32_0, %c0_i32_1 : i32, i32, i32
  }
  func.func @transform_7(%arg0: i32) -> (i32, i32, i32) {
    %c0_i32 = arith.constant 0 : i32
    %c0_i32_0 = arith.constant 0 : i32
    %c0_i32_1 = arith.constant 0 : i32
    %c0_i32_2 = arith.constant 0 : i32
    return %c0_i32, %c0_i32_0, %c0_i32_1 : i32, i32, i32
  }
  func.func @transform_8(%arg0: i32) -> (i32, i32, i32) {
    %c0_i32 = arith.constant 0 : i32
    %c0_i32_0 = arith.constant 0 : i32
    %c0_i32_1 = arith.constant 0 : i32
    %c0_i32_2 = arith.constant 0 : i32
    return %c0_i32, %c0_i32_0, %c0_i32_1 : i32, i32, i32
  }
  func.func @transform_9(%arg0: i32) -> (i32, i32) {
    %c0_i32 = arith.constant 0 : i32
    %c0_i32_0 = arith.constant 0 : i32
    %c0_i32_1 = arith.constant 0 : i32
    return %c0_i32, %c0_i32_0 : i32, i32
  }
  func.func @transform_10(%arg0: i32) -> (i32, i32) {
    %c0_i32 = arith.constant 0 : i32
    %c0_i32_0 = arith.constant 0 : i32
    %c0_i32_1 = arith.constant 0 : i32
    return %c0_i32, %c0_i32_0 : i32, i32
  }
  func.func @transform_11(%arg0: i32) -> (i32, i32, i32) {
    %c0_i32 = arith.constant 0 : i32
    %c0_i32_0 = arith.constant 0 : i32
    %c0_i32_1 = arith.constant 0 : i32
    return %arg0, %c0_i32, %c0_i32_0 : i32, i32, i32
  }
}

</mosaic_0001>

<bundles_post_ra>
// kernel: encoder_forward.2
= control target key start
LH: loop header
LB: loop body
LE: loop exit
PB: predicated region body
PF: predicated region fallthrough
CT: control target
= control target key end

     0   :  { %s464_s12 = smov 0   ;;  %s466_s13 = smov 0   ;;  %s503_s0 = inlined_call_operand.vmem [shape: bf16[2,48,128], index: 0, kind: input, shape index: {}]   ;;  %s504_s1 = inlined_call_operand.vmem [shape: bf16[8,48], index: 1, kind: input, shape index: {}]   ;;  %s505_s2 = inlined_call_operand.vmem [shape: f32[8,1], index: 2, kind: input, shape index: {}]   ;;  %s506_s3 = inlined_call_operand.vmem [shape: bf16[2,8,128], index: 3, kind: output, shape index: {}]  }
   0x1   :  { %s468_s14 = smov 0  }
   0x2 LB: > { %s25_s15 = sadd.s32 1, %s435_s13  ;;  %p362_p0 = scmp.ge.s32.totalorder %s439_s14, 1  ;;  %s439_s14 = sphi %s468_s14, %s13_s14   ;;  %s435_s13 = sphi %s466_s13, %s508_s13   ;;  %s431_s12 = sphi %s464_s12, %s507_s12  }
   0x3   : > { %p27_p1 = scmp.ge.s32.totalorder %s25_s15, 2  ;;  %p156_p2 = scmp.lt.s32.totalorder %s439_s14, 3 }
   0x5   : > { %s510_s15 = smov (%p27_p1, %s25_s15), 0  ;;  %p157_p3 = pnand %p362_p0, %p156_p2 }
   0x6   : > { %p185_p4 = scmp.lt.s32.totalorder (!%p157_p3), %s431_s12, 1  ;;  %v441_v0 = vmov (!%p157_p3), 0.0   ;;  %vm442_vm0 = vmmov (!%p157_p3), 0   ;;  %v208_v1 = vld [vmem:[%s505_s2] sm:$0xff] (!%p157_p3)  ;;  %v443_v2 = vmov (!%p157_p3), 0   ;;  %vm232_vm1 = vcmask (!%p157_p3), 392192  }
   0x7   : > { %160 = sbr.rel (%p157_p3) target bundleno = 250 (0xfa), region = 32  ;;  %375 = vmatprep.subr.bf16.mxu0 (!%p157_p3), %v441_v0  ;;  %381 = vmatprep.mubr.msk.bf16.mxu0 (!%p157_p3), %vm442_vm0, %v441_v0  ;;  %v201_v6 = vld [vmem:[%s504_s1] sm:$0xf] (!%p157_p3) }
   0x8   : > { %413 = vset.pattern.permute.xlu0 (!%p157_p3), %v443_v2 }
   0x9   : > { %211 = vperm.xlu0 (!%p157_p3), %413, %v208_v1  }
   0xe   : > { %s512_s12 = smov (!%p185_p4, %s431_s12), 1 }
   0xf   : > { %s385_s18 = smul.u32 24, %s512_s12  ;;  %s364_s24 = sshll.u32 %s512_s12, 2 }
  0x10   : > { %s199_s27 = scalar_lea.vmem %s506_s3, %s364_s24 }
  0x11   : > { %s192_s21 = scalar_lea.vmem %s503_s0, %s385_s18 }
  0x12   : > { %v414_v3 = vld [vmem:[%s192_s21] sm:$0xff]   ;;  %v415_v4 = vld [vmem:[%s192_s21 + $0x8] sm:$0xff]   ;;  %v416_v5 = vld [vmem:[%s192_s21 + $0x10] sm:$0xff]  }
  0x13   : > { %376 = vmatpush3.bf16.msra.mxu0 %v414_v3 }
  0x14   : > { %377 = vmatprep.subr.bf16.mxu0 %v441_v0 }
  0x17   : > { %378 = vmatpush3.bf16.msra.mxu0 %v415_v4 }
  0x18   : > { %379 = vmatprep.subr.bf16.mxu0 %v441_v0 }
  0x1b   : > { %380 = vmatpush3.bf16.msra.mxu0 %v416_v5 }
  0x1e   : > { %382 = vmatmul.mubr.msk.bf16.vlgmr.msra.gmra.mrb[0].mxu0 %vm232_vm1, %v201_v6 }
  0x88   : > { %v212_v7 = vpop.permute.xlu0 %211 }
  0xf1   : > { %v270_v8 = vpop.f32.mrb[0].mxu0 }
  0xf2   : > { %v271_v9 = vadd.f32 %v270_v8, %v212_v7  ;;  %v383_v10 = vpop.f32.mrb[1].mxu0 }
  0xf3   : > { %v273_v11 = vpop.f32.mrb[2].mxu0 }
  0xf4   : > { %vm276_vm2 = vcmp.gt.f32.partialorder %v271_v9, 0.0  ;;  %v277_v12 = vmul.f32 0.01, %v271_v9  ;;  %v384_v13 = vpop.f32.mrb[3].mxu0 }
  0xf6   : > { %v278_v14 = vsel %vm276_vm2, %v271_v9, %v277_v12 }
  0xf7   : > { %v279_v15 = vpack.c.bf16 %v278_v14, %v278_v14 }
  0xf9   : > { %280 = vst [vmem:[%s199_s27] sm:$0xf] %v279_v15 }
  0xfa PF: > { %s13_s14 = sadd.s32 1, %s439_s14   ;;  %s507_s12 = smov %s435_s13 }
  0xfb   : > { %p10_p5 = scmp.ge.s32.totalorder %s13_s14, 4   ;;  %s508_s13 = smov %s510_s15 }
  0xfd   :  { %12 = sbr.rel (!%p10_p5) target bundleno = 2 (0x2), region = 62 }

// kernel: encoder_forward.3
= control target key start
LH: loop header
LB: loop body
LE: loop exit
PB: predicated region body
PF: predicated region fallthrough
CT: control target
= control target key end

     0   :  { %s2367_s17 = smov 0   ;;  %s2932_s0 = inlined_call_operand.vmem [shape: bf16[2,128,16], index: 0, kind: input, shape index: {}]   ;;  %s2933_s1 = inlined_call_operand.vmem [shape: bf16[16,128], index: 1, kind: input, shape index: {}]   ;;  %s2934_s2 = inlined_call_operand.vmem [shape: f32[16,1], index: 2, kind: input, shape index: {}]   ;;  %s2935_s3 = inlined_call_operand.vmem [shape: bf16[16,144], index: 3, kind: input, shape index: {}]   ;;  %s2936_s4 = inlined_call_operand.vmem [shape: f32[16,1], index: 4, kind: input, shape index: {}]   ;;  %s2937_s5 = inlined_call_operand.vmem [shape: bf16[6,16,144], index: 5, kind: input, shape index: {}]   ;;  %s2938_s6 = inlined_call_operand.vmem [shape: f32[6,16,1], index: 6, kind: input, shape index: {}]   ;;  %s2939_s7 = inlined_call_operand.vmem [shape: bf16[6,16,16], index: 7, kind: input, shape index: {}]   ;;  %s2940_s8 = inlined_call_operand.vmem [shape: f32[6,16,1], index: 8, kind: input, shape index: {}]   ;;  %s2941_s9 = inlined_call_operand.vmem [shape: bf16[16,16], index: 9, kind: input, shape index: {}]   ;;  %s2942_s10 = inlined_call_operand.vmem [shape: f32[16,1], index: 10, kind: input, shape index: {}]   ;;  %s2943_s11 = inlined_call_operand.vmem [shape: f32[2,16,16], index: 11, kind: output, shape index: {}]  }
   0x1 LB: > { %s2034_s18 = sadd.s32 4294967295, %s2288_s17   ;;  %p2038_p0 = scmp.ge.s32.totalorder %s2288_s17, 1  ;;  %s2288_s17 = sphi %s2367_s17, %s21_s17  }
   0x2   : > { %p337_p1 = scmp.lt.s32.totalorder %s2288_s17, 3 }
   0x4   : > { %p338_p2 = pnand %p2038_p0, %p337_p1 }
   0x5   : > { %p377_p3 = scmp.lt.s32.totalorder (!%p338_p2), %s2034_s18, 1  ;;  %v2290_v0 = vmov (!%p338_p2), 0.0   ;;  %vm2291_vm0 = vmmov (!%p338_p2), 0   ;;  %v426_v1 = vld [vmem:[%s2934_s2] sm:$0xff] (!%p338_p2)  ;;  %v2292_v2 = vmov (!%p338_p2), 0   ;;  %v427_v3 = vld [vmem:[%s2934_s2 + $0x8] sm:$0xff] (!%p338_p2)  ;;  %v388_v5 = vlaneseq (!%p338_p2) }
   0x6   : > { %341 = sbr.rel (%p338_p2) target bundleno = 5229 (0x146d), region = 64  ;;  %2156 = vmatprep.subr.bf16.mxu0 (!%p338_p2), %v2290_v0  ;;  %2172 = vmatprep.mubr.msk.bf16.mxu0 (!%p338_p2), %vm2291_vm0, %v2290_v0  ;;  %s2293_s27 = smov (!%p338_p2), 2   ;;  %v2253_v16 = vld [vmem:[%s2933_s1] sm:$0xff] (!%p338_p2)   ;;  %vm551_vm5 = vcmask (!%p338_p2), 39936   ;;  %vm554_vm6 = vcmask (!%p338_p2), 171008   ;;  %v542_v60 = vld [vmem:[%s2936_s4 + $0x8] sm:$0xff] (!%p338_p2) }
   0x7   : > { %2243 = vset.pattern.permute.xlu0 (!%p338_p2), %v2292_v2  ;;  %646 = vmatprep.subr.bf16.mxu1 (!%p338_p2), %v2292_v2  ;;  %v389_v7 = vand.u32 (!%p338_p2), 127, %v388_v5  ;;  %s2294_s30 = smov (!%p338_p2), 6   ;;  %s2295_s12 = smov (!%p338_p2), 10   ;;  %v2256_v61 = vld [vmem:[%s2935_s3 + $0x4] ss:$8 sps:$4 sm:$0xff] (!%p338_p2)   ;;  %vm642_vm7 = vcmask (!%p338_p2), 130048  }
   0x8   : > { %430 = vperm.xlu0 (!%p338_p2), %2243, %v426_v1   ;;  %2244 = vset.pattern.permute.xlu1 (!%p338_p2), %v2292_v2  ;;  %s2296_s13 = smov (!%p338_p2), 5   ;;  %s2297_s14 = smov (!%p338_p2), 4   ;;  %v541_v62 = vld [vmem:[%s2936_s4] sm:$0xff] (!%p338_p2) }
   0x9   : > { %v394_v8 = vand.u32 (!%p338_p2), 3, %v389_v7  ;;  %s2298_s15 = smov (!%p338_p2), 8   ;;  %s2299_s16 = smov (!%p338_p2), 127   ;;  %2056 = vmatprep.mubr.msk.bf16.mxu1 (!%p338_p2), %vm642_vm7, %v2256_v61 }
   0xa   : > { %s2300_s19 = smov (!%p338_p2), 126   ;;  %s2301_s20 = smov (!%p338_p2), 124  }
   0xb   : > { %vm405_vm1 = vcmp.ne.s32.totalorder (!%p338_p2), %v394_v8, 3  ;;  %vm402_vm4 = vcmp.ne.s32.totalorder (!%p338_p2), %v394_v8, 0  ;;  %s2302_s21 = smov (!%p338_p2), 123   ;;  %s2303_s22 = smov (!%p338_p2), 122  }
   0xc   : > { %435 = vperm.xlu0 (!%p338_p2), %2243, %v427_v3   ;;  %v2044_v10 = vsel (!%p338_p2), %vm405_vm1, 1.0, %v2290_v0  ;;  %v2408_v29 = vsel (!%p338_p2), %vm402_vm4, 1.0, %v2290_v0  ;;  %s2305_s24 = smov (!%p338_p2), 119   ;;  %s2306_s25 = smov (!%p338_p2), 118  }
   0xd   : > { %s2945_s18 = smov (!%p377_p3, %s2034_s18), 1 }
   0xe   : > { %s2131_s23 = sshll.u32 %s2945_s18, 6 }
   0xf   : > { %s381_s26 = scalar_lea.vmem %s2932_s0, %s2131_s23  ;;  %s2304_s23 = smov 120  }
  0x10   : > { %v2245_v4 = vld [vmem:[%s381_s26] sm:$0xff]   ;;  %v2246_v6 = vld [vmem:[%s381_s26 + $0x8] sm:$0xff]   ;;  %v2247_v9 = vld [vmem:[%s381_s26 + $0x10] sm:$0xff]   ;;  %562 = vrot.lane.b32.xlu0 %v2044_v10, %s2293_s27 }
  0x11   : > { %2157 = vmatpush3.bf16.msra.mxu0 %v2245_v4  ;;  %v2248_v11 = vld [vmem:[%s381_s26 + $0x18] sm:$0xff]   ;;  %v2249_v12 = vld [vmem:[%s381_s26 + $0x20] sm:$0xff]   ;;  %v2250_v13 = vld [vmem:[%s381_s26 + $0x28] sm:$0xff]  }
  0x12   : > { %2158 = vmatprep.subr.bf16.mxu0 %v2290_v0  ;;  %v2251_v14 = vld [vmem:[%s381_s26 + $0x30] sm:$0xff]   ;;  %v2252_v15 = vld [vmem:[%s381_s26 + $0x38] sm:$0xff]  }
  0x14   : > { %575 = vrot.lane.b32.xlu0 %v2044_v10, %s2294_s30 }
  0x15   : > { %2159 = vmatpush3.bf16.msra.mxu0 %v2246_v6 }
  0x16   : > { %2160 = vmatprep.subr.bf16.mxu0 %v2290_v0 }
  0x18   : > { %587 = vrot.lane.b32.xlu0 %v2044_v10, %s2295_s12 }
  0x19   : > { %2161 = vmatpush3.bf16.msra.mxu0 %v2247_v9  ;;  %v2254_v9 = vld [vmem:[%s2935_s3] ss:$8 sps:$4 sm:$0xff]  }
  0x1a   : > { %2162 = vmatprep.subr.bf16.mxu0 %v2290_v0 }
  0x1d   : > { %2163 = vmatpush3.bf16.msra.mxu0 %v2248_v11 }
  0x1e   : > { %2164 = vmatprep.subr.bf16.mxu0 %v2290_v0 }
  0x21   : > { %2165 = vmatpush3.bf16.msra.mxu0 %v2249_v12 }
  0x22   : > { %2166 = vmatprep.subr.bf16.mxu0 %v2290_v0 }
  0x25   : > { %2167 = vmatpush3.bf16.msra.mxu0 %v2250_v13 }
  0x26   : > { %2168 = vmatprep.subr.bf16.mxu0 %v2290_v0 }
  0x29   : > { %2169 = vmatpush3.bf16.msra.mxu0 %v2251_v14 }
  0x2a   : > { %2170 = vmatprep.subr.bf16.mxu0 %v2290_v0 }
  0x2d   : > { %2171 = vmatpush3.bf16.msra.mxu0 %v2252_v15 }
  0x2e   : > { %780 = vmatprep.subr.bf16.mxu0 %v2292_v2 }
  0x30   : > { %2173 = vmatmul.mubr.bf16.vlgmr.msra.gmra.mrb[0].mxu0 %v2253_v16 }
  0x87   : > { %v431_v17 = vpop.permute.xlu0 %430 }
  0x8b   : > { %v436_v21 = vpop.permute.xlu0 %435 }
  0x8f   : > { %v2414_v33 = vpop.permute.xlu0 %562 }
  0x93   : > { %v2427_v47 = vpop.permute.xlu0 %575 }
  0x97   : > { %v2439_v55 = vpop.permute.xlu0 %587 }
 0x103   : > { %v526_v18 = vpop.f32.mrb[0].mxu0 }
 0x104   : > { %v527_v19 = vadd.f32 %v526_v18, %v431_v17  ;;  %v2174_v20 = vpop.f32.mrb[1].mxu0 }
 0x105   : > { %v529_v22 = vpop.f32.mrb[2].mxu0 }
 0x106   : > { %v530_v23 = vadd.f32 %v529_v22, %v436_v21  ;;  %v2175_v24 = vpop.f32.mrb[3].mxu0  ;;  %vm533_vm2 = vcmp.gt.f32.partialorder %v527_v19, 0.0  ;;  %v535_v25 = vmul.f32 0.01, %v527_v19 }
 0x108   : > { %v536_v26 = vmul.f32 0.01, %v530_v23  ;;  %v537_v27 = vsel %vm533_vm2, %v527_v19, %v535_v25  ;;  %vm534_vm3 = vcmp.gt.f32.partialorder %v530_v23, 0.0 }
 0x109   : > { %545 = vrot.lane.b32.xlu1 %v537_v27, %s2296_s13 }
 0x10a   : > { %v538_v28 = vsel %vm534_vm3, %v530_v23, %v536_v26 }
 0x10d   : > { %547 = vrot.lane.b32.xlu1 %v538_v28, %s2296_s13 }
 0x111   : > { %569 = vrot.lane.b32.xlu1 %v2408_v29, %s2297_s14 }
 0x115   : > { %581 = vrot.lane.b32.xlu1 %v2408_v29, %s2298_s15 }
 0x17b   : > { %v546_v30 = vpop.permute.xlu1 %545 }
 0x17c   : > { %v552_v31 = vsel %vm551_vm5, 0.0, %v546_v30 }
 0x17d   : > { %v555_v32 = vsel %vm554_vm6, %v552_v31, 0.0 }
 0x17e   : > { %v565_v37 = vmul.f32 %v2414_v33, %v555_v32  ;;  %v557_v40 = vmul.f32 %v2408_v29, %v555_v32  ;;  %v578_v51 = vmul.f32 %v2427_v47, %v555_v32  ;;  %v590_v58 = vmul.f32 %v2439_v55, %v555_v32 }
 0x17f   : > { %v548_v34 = vpop.permute.xlu1 %547 }
 0x180   : > { %v553_v35 = vsel %vm551_vm5, 0.0, %v548_v34 }
 0x181   : > { %v556_v36 = vsel %vm554_vm6, %v553_v35, 0.0 }
 0x182   : > { %v560_v38 = vpack.c.bf16 %v556_v36, %v555_v32  ;;  %v566_v39 = vmul.f32 %v2414_v33, %v556_v36  ;;  %v558_v41 = vmul.f32 %v2408_v29, %v556_v36  ;;  %v579_v49 = vmul.f32 %v2427_v47, %v556_v36 }
 0x183   : > { %v2422_v42 = vpop.permute.xlu1 %569  ;;  %v591_v57 = vmul.f32 %v2439_v55, %v556_v36 }
 0x184   : > { %594 = vrot.lane.b32.xlu1 %v560_v38, %s2299_s16  ;;  %v567_v43 = vpack.c.bf16 %v566_v39, %v565_v37  ;;  %v559_v44 = vpack.c.bf16 %v558_v41, %v557_v40  ;;  %v572_v45 = vmul.f32 %v2422_v42, %v555_v32  ;;  %v573_v46 = vmul.f32 %v2422_v42, %v556_v36 }
 0x185   : > { %v580_v54 = vpack.c.bf16 %v579_v49, %v578_v51  ;;  %v592_v59 = vpack.c.bf16 %v591_v57, %v590_v58  ;;  %v827_v57 = vld [vmem:[%s2940_s8 + $0x8] sm:$0xff] }
 0x186   : > { %598 = vrot.lane.b32.xlu0 %v567_v43, %s2300_s19  ;;  %647 = vmatpush1.bf16.msra.mxu1 %v559_v44  ;;  %v574_v48 = vpack.c.bf16 %v573_v46, %v572_v45 }
 0x187   : > { %v2431_v50 = vpop.permute.xlu1 %581  ;;  %648 = vmatprep.subr.bf16.mxu1 %v2292_v2 }
 0x188   : > { %602 = vrot.lane.b32.xlu1 %v574_v48, %s2301_s20  ;;  %v584_v52 = vmul.f32 %v2431_v50, %v555_v32  ;;  %v585_v53 = vmul.f32 %v2431_v50, %v556_v36 }
 0x18a   : > { %605 = vrot.lane.b32.xlu0 %v560_v38, %s2302_s21  ;;  %v586_v56 = vpack.c.bf16 %v585_v53, %v584_v52  ;;  %v695_v52 = vld [vmem:[%s2938_s6] sm:$0xff]  ;;  %v696_v53 = vld [vmem:[%s2938_s6 + $0x8] sm:$0xff] }
 0x18c   : > { %609 = vrot.lane.b32.xlu1 %v580_v54, %s2303_s22  ;;  %v2257_v54 = vld [vmem:[%s2937_s5 + $0x4] ss:$8 sps:$4 sm:$0xff]  }
 0x18d   : > { %2059 = vmatprep.mubr.msk.bf16.mxu0 %vm642_vm7, %v2257_v54 }
 0x18e   : > { %613 = vrot.lane.b32.xlu0 %v586_v56, %s2304_s23  ;;  %v826_v56 = vld [vmem:[%s2940_s8] sm:$0xff] }
 0x190   : > { %616 = vrot.lane.b32.xlu1 %v560_v38, %s2305_s24 }
 0x192   : > { %620 = vrot.lane.b32.xlu0 %v592_v59, %s2306_s25 }
 0x194   : > { %625 = vperm.xlu1 %2244, %v541_v62  }
 0x196   : > { %630 = vperm.xlu0 %2243, %v542_v60  }
 0x1f6   : > { %v595_v63 = vpop.permute.xlu1 %594 }
 0x1f7   : > { %649 = vmatpush1.bf16.msra.mxu1 %v595_v63 }
 0x1f8   : > { %650 = vmatprep.subr.bf16.mxu1 %v2292_v2  ;;  %v599_v1 = vpop.permute.xlu0 %598 }
 0x1fa   : > { %v603_v3 = vpop.permute.xlu1 %602 }
 0x1fb   : > { %651 = vmatpush1.bf16.msra.mxu1 %v599_v1 }
 0x1fc   : > { %652 = vmatprep.subr.bf16.mxu1 %v2292_v2  ;;  %v606_v4 = vpop.permute.xlu0 %605 }
 0x1fe   : > { %v610_v5 = vpop.permute.xlu1 %609 }
 0x1ff   : > { %653 = vmatpush1.bf16.msra.mxu1 %v603_v3 }
 0x200   : > { %654 = vmatprep.subr.bf16.mxu1 %v2292_v2  ;;  %v614_v6 = vpop.permute.xlu0 %613 }
 0x202   : > { %v617_v7 = vpop.permute.xlu1 %616 }
 0x203   : > { %655 = vmatpush1.bf16.msra.mxu1 %v606_v4  ;;  %v2259_v4 = vld [vmem:[%s2937_s5] ss:$8 sps:$4 sm:$0xff]  }
 0x204   : > { %656 = vmatprep.subr.bf16.mxu1 %v2292_v2  ;;  %v621_v8 = vpop.permute.xlu0 %620 }
 0x207   : > { %657 = vmatpush1.bf16.msra.mxu1 %v610_v5 }
 0x208   : > { %658 = vmatprep.subr.bf16.mxu1 %v2292_v2 }
 0x20b   : > { %659 = vmatpush1.bf16.msra.mxu1 %v614_v6 }
 0x20c   : > { %660 = vmatprep.subr.bf16.mxu1 %v2292_v2 }
 0x20f   : > { %661 = vmatpush1.bf16.msra.mxu1 %v617_v7 }
 0x210   : > { %662 = vmatprep.subr.bf16.mxu1 %v2292_v2 }
 0x213   : > { %663 = vmatpush1.bf16.msra.mxu1 %v621_v8  ;;  %v626_v10 = vpop.permute.xlu1 %625 }
 0x214   : > { %2176 = vmatprep.subr.bf16.mxu1 %v2290_v0 }
 0x215   : > { %v631_v14 = vpop.permute.xlu0 %630 }
 0x216   : > { %679 = vmatmul.mubr.bf16.vlgmr.msra.gmra.mrb[0].mxu1 %v2254_v9 }
 0x217   : > { %2178 = vmatprep.mubr.msk.bf16.mxu1 %vm2291_vm0, %v2290_v0 }
 0x2e9   : > { %v680_v11 = vpop.f32.mrb[0].mxu1 }
 0x2ea   : > { %v681_v12 = vadd.f32 %v680_v11, %v626_v10  ;;  %v682_v13 = vpop.f32.mrb[1].mxu1 }
 0x2eb   : > { %v683_v15 = vpop.f32.mrb[2].mxu1 }
 0x2ec   : > { %v689_v16 = vmul.f32 0.01, %v681_v12  ;;  %v684_v17 = vadd.f32 %v683_v15, %v631_v14  ;;  %v685_v18 = vpop.f32.mrb[3].mxu1  ;;  %vm687_vm8 = vcmp.gt.f32.partialorder %v681_v12, 0.0 }
 0x2ee   : > { %v690_v19 = vmul.f32 0.01, %v684_v17  ;;  %v2470_v20 = vsel %vm687_vm8, %v681_v12, %v689_v16  ;;  %vm688_vm9 = vcmp.gt.f32.partialorder %v684_v17, 0.0  ;;  %v2260_v16 = vld [vmem:[%s2939_s7] sm:$0xff]  }
 0x2ef   : > { %699 = vrot.lane.b32.xlu1 %v2470_v20, %s2296_s13 }
 0x2f0   : > { %v2474_v21 = vsel %vm688_vm9, %v684_v17, %v690_v19 }
 0x2f1   : > { %701 = vrot.lane.b32.xlu0 %v2474_v21, %s2296_s13 }
 0x361   : > { %v700_v22 = vpop.permute.xlu1 %699 }
 0x362   : > { %v705_v23 = vsel %vm551_vm5, 0.0, %v700_v22 }
 0x363   : > { %v707_v24 = vsel %vm554_vm6, %v705_v23, 0.0  ;;  %v702_v25 = vpop.permute.xlu0 %701 }
 0x364   : > { %v706_v26 = vsel %vm551_vm5, 0.0, %v702_v25  ;;  %v713_v28 = vmul.f32 %v707_v24, %v2414_v33  ;;  %v709_v30 = vmul.f32 %v2408_v29, %v707_v24  ;;  %v716_v38 = vmul.f32 %v707_v24, %v2422_v42 }
 0x365   : > { %v708_v27 = vsel %vm554_vm6, %v706_v26, 0.0  ;;  %v719_v41 = vmul.f32 %v707_v24, %v2427_v47  ;;  %v722_v45 = vmul.f32 %v707_v24, %v2431_v50  ;;  %v725_v49 = vmul.f32 %v707_v24, %v2439_v55 }
 0x366   : > { %v712_v31 = vpack.c.bf16 %v708_v27, %v707_v24  ;;  %v714_v32 = vmul.f32 %v708_v27, %v2414_v33  ;;  %v710_v34 = vmul.f32 %v2408_v29, %v708_v27  ;;  %v717_v35 = vmul.f32 %v708_v27, %v2422_v42 }
 0x367   : > { %v720_v40 = vmul.f32 %v708_v27, %v2427_v47  ;;  %v723_v43 = vmul.f32 %v708_v27, %v2431_v50  ;;  %v726_v48 = vmul.f32 %v708_v27, %v2439_v55 }
 0x368   : > { %729 = vrot.lane.b32.xlu1 %v712_v31, %s2299_s16  ;;  %v715_v36 = vpack.c.bf16 %v714_v32, %v713_v28  ;;  %v711_v37 = vpack.c.bf16 %v710_v34, %v709_v30  ;;  %v718_v39 = vpack.c.bf16 %v717_v35, %v716_v38 }
 0x369   : > { %v721_v44 = vpack.c.bf16 %v720_v40, %v719_v41  ;;  %v724_v46 = vpack.c.bf16 %v723_v43, %v722_v45  ;;  %v727_v51 = vpack.c.bf16 %v726_v48, %v725_v49 }
 0x36a   : > { %733 = vrot.lane.b32.xlu0 %v715_v36, %s2300_s19  ;;  %781 = vmatpush1.bf16.msra.mxu0 %v711_v37 }
 0x36b   : > { %782 = vmatprep.subr.bf16.mxu0 %v2292_v2 }
 0x36c   : > { %737 = vrot.lane.b32.xlu1 %v718_v39, %s2301_s20 }
 0x36e   : > { %740 = vrot.lane.b32.xlu0 %v712_v31, %s2302_s21 }
 0x370   : > { %744 = vrot.lane.b32.xlu1 %v721_v44, %s2303_s22 }
 0x372   : > { %748 = vrot.lane.b32.xlu0 %v724_v46, %s2304_s23 }
 0x374   : > { %751 = vrot.lane.b32.xlu1 %v712_v31, %s2305_s24 }
 0x376   : > { %755 = vrot.lane.b32.xlu0 %v727_v51, %s2306_s25 }
 0x378   : > { %760 = vperm.xlu1 %2244, %v695_v52  }
 0x37a   : > { %765 = vperm.xlu0 %2243, %v696_v53  }
 0x37c   : > { %830 = vperm.xlu1 %2244, %v826_v56  }
 0x37e   : > { %835 = vperm.xlu0 %2243, %v827_v57  }
 0x3da   : > { %v730_v58 = vpop.permute.xlu1 %729 }
 0x3db   : > { %783 = vmatpush1.bf16.msra.mxu0 %v730_v58 }
 0x3dc   : > { %784 = vmatprep.subr.bf16.mxu0 %v2292_v2  ;;  %v734_v59 = vpop.permute.xlu0 %733 }
 0x3de   : > { %v738_v60 = vpop.permute.xlu1 %737 }
 0x3df   : > { %785 = vmatpush1.bf16.msra.mxu0 %v734_v59 }
 0x3e0   : > { %786 = vmatprep.subr.bf16.mxu0 %v2292_v2  ;;  %v741_v61 = vpop.permute.xlu0 %740 }
 0x3e2   : > { %v745_v62 = vpop.permute.xlu1 %744 }
 0x3e3   : > { %787 = vmatpush1.bf16.msra.mxu0 %v738_v60  ;;  %v2064_v60 = vld [vmem:[%s2938_s6 + $0x10] sm:$0xff] }
 0x3e4   : > { %788 = vmatprep.subr.bf16.mxu0 %v2292_v2  ;;  %v749_v63 = vpop.permute.xlu0 %748 }
 0x3e6   : > { %v752_v1 = vpop.permute.xlu1 %751 }
 0x3e7   : > { %789 = vmatpush1.bf16.msra.mxu0 %v741_v61  ;;  %v2065_v61 = vld [vmem:[%s2938_s6 + $0x18] sm:$0xff] }
 0x3e8   : > { %790 = vmatprep.subr.bf16.mxu0 %v2292_v2  ;;  %v756_v3 = vpop.permute.xlu0 %755 }
 0x3eb   : > { %791 = vmatpush1.bf16.msra.mxu0 %v745_v62  ;;  %v2261_v62 = vld [vmem:[%s2937_s5 + $0x14] ss:$8 sps:$4 sm:$0xff]  }
 0x3ec   : > { %792 = vmatprep.subr.bf16.mxu0 %v2292_v2 }
 0x3ef   : > { %793 = vmatpush1.bf16.msra.mxu0 %v749_v63  ;;  %v2071_v63 = vld [vmem:[%s2940_s8 + $0x10] sm:$0xff] }
 0x3f0   : > { %794 = vmatprep.subr.bf16.mxu0 %v2292_v2 }
 0x3f3   : > { %795 = vmatpush1.bf16.msra.mxu0 %v752_v1  ;;  %v2072_v1 = vld [vmem:[%s2940_s8 + $0x18] sm:$0xff] }
 0x3f4   : > { %796 = vmatprep.subr.bf16.mxu0 %v2292_v2 }
 0x3f7   : > { %797 = vmatpush1.bf16.msra.mxu0 %v756_v3  ;;  %v761_v5 = vpop.permute.xlu1 %760 }
 0x3f8   : > { %2182 = vmatprep.subr.bf16.mxu0 %v2290_v0 }
 0x3f9   : > { %v766_v9 = vpop.permute.xlu0 %765 }
 0x3fa   : > { %813 = vmatmul.mubr.bf16.vlgmr.msra.gmra.mrb[4].mxu0 %v2259_v4 }
 0x3fb   : > { %2184 = vmatprep.mubr.msk.bf16.mxu0 %vm2291_vm0, %v2290_v0  ;;  %v831_v17 = vpop.permute.xlu1 %830 }
 0x3fd   : > { %v836_v23 = vpop.permute.xlu0 %835 }
 0x4cd   : > { %v814_v6 = vpop.f32.mrb[4].mxu0 }
 0x4ce   : > { %v815_v7 = vadd.f32 %v814_v6, %v761_v5  ;;  %v816_v8 = vpop.f32.mrb[5].mxu0 }
 0x4cf   : > { %v817_v10 = vpop.f32.mrb[6].mxu0 }
 0x4d0   : > { %v818_v11 = vadd.f32 %v817_v10, %v766_v9  ;;  %v819_v12 = vpop.f32.mrb[7].mxu0  ;;  %v821_v13 = vmax.f32 %v815_v7, 0.0 }
 0x4d2   : > { %v822_v14 = vmax.f32 %v818_v11, 0.0  ;;  %v2263_v11 = vld [vmem:[%s2937_s5 + $0x10] ss:$8 sps:$4 sm:$0xff]  }
 0x4d4   : > { %v825_v15 = vpack.c.bf16 %v822_v14, %v821_v13 }
 0x4d6   : > { %2177 = vmatpush3.bf16.msra.mxu1 %v825_v15 }
 0x4d7   : > { %980 = vmatprep.subr.bf16.mxu1 %v2292_v2 }
 0x4d9   : > { %2179 = vmatmul.mubr.msk.bf16.vlgmr.msra.gmra.mrb[4].mxu1 %vm642_vm7, %v2260_v16 }
 0x4da   : > { %2068 = vmatprep.mubr.msk.bf16.mxu1 %vm642_vm7, %v2261_v62 }
 0x5ac   : > { %v880_v18 = vpop.f32.mrb[4].mxu1 }
 0x5ad   : > { %v881_v19 = vadd.f32 %v880_v18, %v831_v17  ;;  %v2180_v22 = vpop.f32.mrb[5].mxu1 }
 0x5ae   : > { %v883_v24 = vpop.f32.mrb[6].mxu1 }
 0x5af   : > { %v2538_v25 = vadd.f32 %v881_v19, %v2470_v20  ;;  %v884_v26 = vadd.f32 %v883_v24, %v836_v23  ;;  %v2181_v27 = vpop.f32.mrb[7].mxu1 }
 0x5b1   : > { %v889_v28 = vmax.f32 %v2538_v25, 0.0  ;;  %v2542_v30 = vadd.f32 %v884_v26, %v2474_v21  ;;  %v2264_v26 = vld [vmem:[%s2939_s7 + $0x8] sm:$0xff]  }
 0x5b3   : > { %v890_v31 = vmax.f32 %v2542_v30, 0.0  ;;  %899 = vrot.lane.b32.xlu1 %v889_v28, %s2296_s13 }
 0x5b5   : > { %901 = vrot.lane.b32.xlu0 %v890_v31, %s2296_s13 }
 0x625   : > { %v900_v32 = vpop.permute.xlu1 %899 }
 0x626   : > { %v905_v20 = vsel %vm551_vm5, 0.0, %v900_v32 }
 0x627   : > { %v907_v34 = vsel %vm554_vm6, %v905_v20, 0.0  ;;  %v902_v35 = vpop.permute.xlu0 %901 }
 0x628   : > { %v906_v36 = vsel %vm551_vm5, 0.0, %v902_v35  ;;  %v913_v37 = vmul.f32 %v907_v34, %v2414_v33  ;;  %v909_v38 = vmul.f32 %v2408_v29, %v907_v34  ;;  %v916_v46 = vmul.f32 %v907_v34, %v2422_v42 }
 0x629   : > { %v908_v21 = vsel %vm554_vm6, %v906_v36, 0.0  ;;  %v919_v51 = vmul.f32 %v907_v34, %v2427_v47  ;;  %v922_v54 = vmul.f32 %v907_v34, %v2431_v50  ;;  %v925_v58 = vmul.f32 %v907_v34, %v2439_v55 }
 0x62a   : > { %v912_v39 = vpack.c.bf16 %v908_v21, %v907_v34  ;;  %v914_v40 = vmul.f32 %v908_v21, %v2414_v33  ;;  %v910_v41 = vmul.f32 %v2408_v29, %v908_v21  ;;  %v917_v43 = vmul.f32 %v908_v21, %v2422_v42 }
 0x62b   : > { %v920_v49 = vmul.f32 %v908_v21, %v2427_v47  ;;  %v923_v52 = vmul.f32 %v908_v21, %v2431_v50  ;;  %v926_v57 = vmul.f32 %v908_v21, %v2439_v55 }
 0x62c   : > { %929 = vrot.lane.b32.xlu1 %v912_v39, %s2299_s16  ;;  %v915_v44 = vpack.c.bf16 %v914_v40, %v913_v37  ;;  %v911_v45 = vpack.c.bf16 %v910_v41, %v909_v38  ;;  %v918_v48 = vpack.c.bf16 %v917_v43, %v916_v46 }
 0x62d   : > { %v921_v53 = vpack.c.bf16 %v920_v49, %v919_v51  ;;  %v924_v56 = vpack.c.bf16 %v923_v52, %v922_v54  ;;  %v927_v59 = vpack.c.bf16 %v926_v57, %v925_v58 }
 0x62e   : > { %933 = vrot.lane.b32.xlu0 %v915_v44, %s2300_s19  ;;  %981 = vmatpush1.bf16.msra.mxu1 %v911_v45 }
 0x62f   : > { %982 = vmatprep.subr.bf16.mxu1 %v2292_v2 }
 0x630   : > { %937 = vrot.lane.b32.xlu1 %v918_v48, %s2301_s20 }
 0x632   : > { %940 = vrot.lane.b32.xlu0 %v912_v39, %s2302_s21 }
 0x634   : > { %944 = vrot.lane.b32.xlu1 %v921_v53, %s2303_s22 }
 0x636   : > { %948 = vrot.lane.b32.xlu0 %v924_v56, %s2304_s23 }
 0x638   : > { %951 = vrot.lane.b32.xlu1 %v912_v39, %s2305_s24 }
 0x63a   : > { %955 = vrot.lane.b32.xlu0 %v927_v59, %s2306_s25 }
 0x63c   : > { %960 = vperm.xlu1 %2244, %v2064_v60  }
 0x63e   : > { %965 = vperm.xlu0 %2243, %v2065_v61  }
 0x640   : > { %1032 = vperm.xlu1 %2244, %v2071_v63  }
 0x642   : > { %1037 = vperm.xlu0 %2243, %v2072_v1  }
 0x69e   : > { %v930_v3 = vpop.permute.xlu1 %929 }
 0x69f   : > { %983 = vmatpush1.bf16.msra.mxu1 %v930_v3 }
 0x6a0   : > { %984 = vmatprep.subr.bf16.mxu1 %v2292_v2  ;;  %v934_v4 = vpop.permute.xlu0 %933 }
 0x6a2   : > { %v938_v5 = vpop.permute.xlu1 %937 }
 0x6a3   : > { %985 = vmatpush1.bf16.msra.mxu1 %v934_v4 }
 0x6a4   : > { %986 = vmatprep.subr.bf16.mxu1 %v2292_v2  ;;  %v941_v6 = vpop.permute.xlu0 %940 }
 0x6a6   : > { %v945_v7 = vpop.permute.xlu1 %944 }
 0x6a7   : > { %987 = vmatpush1.bf16.msra.mxu1 %v938_v5  ;;  %v2077_v5 = vld [vmem:[%s2938_s6 + $0x20] sm:$0xff] }
 0x6a8   : > { %988 = vmatprep.subr.bf16.mxu1 %v2292_v2  ;;  %v949_v8 = vpop.permute.xlu0 %948 }
 0x6aa   : > { %v952_v9 = vpop.permute.xlu1 %951 }
 0x6ab   : > { %989 = vmatpush1.bf16.msra.mxu1 %v941_v6  ;;  %v2078_v6 = vld [vmem:[%s2938_s6 + $0x28] sm:$0xff] }
 0x6ac   : > { %990 = vmatprep.subr.bf16.mxu1 %v2292_v2  ;;  %v956_v10 = vpop.permute.xlu0 %955 }
 0x6af   : > { %991 = vmatpush1.bf16.msra.mxu1 %v945_v7  ;;  %v2265_v7 = vld [vmem:[%s2937_s5 + $0x24] ss:$8 sps:$4 sm:$0xff]  }
 0x6b0   : > { %992 = vmatprep.subr.bf16.mxu1 %v2292_v2 }
 0x6b3   : > { %993 = vmatpush1.bf16.msra.mxu1 %v949_v8  ;;  %v2084_v8 = vld [vmem:[%s2940_s8 + $0x20] sm:$0xff] }
 0x6b4   : > { %994 = vmatprep.subr.bf16.mxu1 %v2292_v2 }
 0x6b7   : > { %995 = vmatpush1.bf16.msra.mxu1 %v952_v9  ;;  %v2085_v9 = vld [vmem:[%s2940_s8 + $0x28] sm:$0xff] }
 0x6b8   : > { %996 = vmatprep.subr.bf16.mxu1 %v2292_v2 }
 0x6bb   : > { %997 = vmatpush1.bf16.msra.mxu1 %v956_v10  ;;  %v961_v12 = vpop.permute.xlu1 %960 }
 0x6bc   : > { %2188 = vmatprep.subr.bf16.mxu1 %v2290_v0 }
 0x6bd   : > { %v966_v16 = vpop.permute.xlu0 %965 }
 0x6be   : > { %1013 = vmatmul.mubr.bf16.vlgmr.msra.gmra.mrb[8].mxu1 %v2263_v11 }
 0x6bf   : > { %2190 = vmatprep.mubr.msk.bf16.mxu1 %vm2291_vm0, %v2290_v0  ;;  %v1033_v27 = vpop.permute.xlu1 %1032 }
 0x6c1   : > { %v1038_v35 = vpop.permute.xlu0 %1037 }
 0x791   : > { %v1014_v13 = vpop.f32.mrb[8].mxu1 }
 0x792   : > { %v1015_v14 = vadd.f32 %v1014_v13, %v961_v12  ;;  %v1016_v15 = vpop.f32.mrb[9].mxu1 }
 0x793   : > { %v1017_v17 = vpop.f32.mrb[10].mxu1 }
 0x794   : > { %v1018_v18 = vadd.f32 %v1017_v17, %v966_v16  ;;  %v1019_v19 = vpop.f32.mrb[11].mxu1  ;;  %v1021_v22 = vmax.f32 %v1015_v14, 0.0 }
 0x796   : > { %v1022_v23 = vmax.f32 %v1018_v18, 0.0  ;;  %v2267_v18 = vld [vmem:[%s2937_s5 + $0x20] ss:$8 sps:$4 sm:$0xff]  }
 0x798   : > { %v1026_v24 = vpack.c.bf16 %v1022_v23, %v1021_v22 }
 0x79a   : > { %2183 = vmatpush3.bf16.msra.mxu0 %v1026_v24 }
 0x79b   : > { %1182 = vmatprep.subr.bf16.mxu0 %v2292_v2 }
 0x79d   : > { %2185 = vmatmul.mubr.msk.bf16.vlgmr.msra.gmra.mrb[8].mxu0 %vm642_vm7, %v2264_v26 }
 0x79e   : > { %2081 = vmatprep.mubr.msk.bf16.mxu0 %vm642_vm7, %v2265_v7 }
 0x870   : > { %v1082_v32 = vpop.f32.mrb[8].mxu0 }
 0x871   : > { %v1083_v20 = vadd.f32 %v1082_v32, %v1033_v27  ;;  %v2186_v34 = vpop.f32.mrb[9].mxu0 }
 0x872   : > { %v1085_v36 = vpop.f32.mrb[10].mxu0 }
 0x873   : > { %v2612_v21 = vadd.f32 %v1083_v20, %v889_v28  ;;  %v1086_v37 = vadd.f32 %v1085_v36, %v1038_v35  ;;  %v2187_v38 = vpop.f32.mrb[11].mxu0 }
 0x875   : > { %v1091_v39 = vmax.f32 %v2612_v21, 0.0  ;;  %v2617_v40 = vadd.f32 %v1086_v37, %v890_v31  ;;  %v2268_v37 = vld [vmem:[%s2939_s7 + $0x10] sm:$0xff]  }
 0x877   : > { %v1092_v41 = vmax.f32 %v2617_v40, 0.0  ;;  %1101 = vrot.lane.b32.xlu1 %v1091_v39, %s2296_s13 }
 0x879   : > { %1103 = vrot.lane.b32.xlu0 %v1092_v41, %s2296_s13 }
 0x8e9   : > { %v1102_v25 = vpop.permute.xlu1 %1101 }
 0x8ea   : > { %v1107_v28 = vsel %vm551_vm5, 0.0, %v1102_v25 }
 0x8eb   : > { %v1109_v43 = vsel %vm554_vm6, %v1107_v28, 0.0  ;;  %v1104_v44 = vpop.permute.xlu0 %1103 }
 0x8ec   : > { %v1108_v30 = vsel %vm551_vm5, 0.0, %v1104_v44  ;;  %v1115_v45 = vmul.f32 %v1109_v43, %v2414_v33  ;;  %v1111_v46 = vmul.f32 %v2408_v29, %v1109_v43  ;;  %v1118_v56 = vmul.f32 %v1109_v43, %v2422_v42 }
 0x8ed   : > { %v1110_v31 = vsel %vm554_vm6, %v1108_v30, 0.0  ;;  %v1121_v59 = vmul.f32 %v1109_v43, %v2427_v47  ;;  %v1124_v62 = vmul.f32 %v1109_v43, %v2431_v50  ;;  %v1127_v3 = vmul.f32 %v1109_v43, %v2439_v55 }
 0x8ee   : > { %v1114_v48 = vpack.c.bf16 %v1110_v31, %v1109_v43  ;;  %v1116_v49 = vmul.f32 %v1110_v31, %v2414_v33  ;;  %v1112_v51 = vmul.f32 %v2408_v29, %v1110_v31  ;;  %v1119_v52 = vmul.f32 %v1110_v31, %v2422_v42 }
 0x8ef   : > { %v1122_v58 = vmul.f32 %v1110_v31, %v2427_v47  ;;  %v1125_v60 = vmul.f32 %v1110_v31, %v2431_v50  ;;  %v1128_v1 = vmul.f32 %v1110_v31, %v2439_v55 }
 0x8f0   : > { %1131 = vrot.lane.b32.xlu1 %v1114_v48, %s2299_s16  ;;  %v1117_v53 = vpack.c.bf16 %v1116_v49, %v1115_v45  ;;  %v1113_v54 = vpack.c.bf16 %v1112_v51, %v1111_v46  ;;  %v1120_v57 = vpack.c.bf16 %v1119_v52, %v1118_v56 }
 0x8f1   : > { %v1123_v61 = vpack.c.bf16 %v1122_v58, %v1121_v59  ;;  %v1126_v63 = vpack.c.bf16 %v1125_v60, %v1124_v62  ;;  %v1129_v4 = vpack.c.bf16 %v1128_v1, %v1127_v3 }
 0x8f2   : > { %1135 = vrot.lane.b32.xlu0 %v1117_v53, %s2300_s19  ;;  %1183 = vmatpush1.bf16.msra.mxu0 %v1113_v54 }
 0x8f3   : > { %1184 = vmatprep.subr.bf16.mxu0 %v2292_v2 }
 0x8f4   : > { %1139 = vrot.lane.b32.xlu1 %v1120_v57, %s2301_s20 }
 0x8f6   : > { %1142 = vrot.lane.b32.xlu0 %v1114_v48, %s2302_s21 }
 0x8f8   : > { %1146 = vrot.lane.b32.xlu1 %v1123_v61, %s2303_s22 }
 0x8fa   : > { %1150 = vrot.lane.b32.xlu0 %v1126_v63, %s2304_s23 }
 0x8fc   : > { %1153 = vrot.lane.b32.xlu1 %v1114_v48, %s2305_s24 }
 0x8fe   : > { %1157 = vrot.lane.b32.xlu0 %v1129_v4, %s2306_s25 }
 0x900   : > { %1162 = vperm.xlu1 %2244, %v2077_v5  }
 0x902   : > { %1167 = vperm.xlu0 %2243, %v2078_v6  }
 0x904   : > { %1234 = vperm.xlu1 %2244, %v2084_v8  }
 0x906   : > { %1239 = vperm.xlu0 %2243, %v2085_v9  }
 0x962   : > { %v1132_v10 = vpop.permute.xlu1 %1131 }
 0x963   : > { %1185 = vmatpush1.bf16.msra.mxu0 %v1132_v10 }
 0x964   : > { %1186 = vmatprep.subr.bf16.mxu0 %v2292_v2  ;;  %v1136_v11 = vpop.permute.xlu0 %1135 }
 0x966   : > { %v1140_v12 = vpop.permute.xlu1 %1139 }
 0x967   : > { %1187 = vmatpush1.bf16.msra.mxu0 %v1136_v11 }
 0x968   : > { %1188 = vmatprep.subr.bf16.mxu0 %v2292_v2  ;;  %v1143_v13 = vpop.permute.xlu0 %1142 }
 0x96a   : > { %v1147_v14 = vpop.permute.xlu1 %1146 }
 0x96b   : > { %1189 = vmatpush1.bf16.msra.mxu0 %v1140_v12  ;;  %v2090_v12 = vld [vmem:[%s2938_s6 + $0x30] sm:$0xff] }
 0x96c   : > { %1190 = vmatprep.subr.bf16.mxu0 %v2292_v2  ;;  %v1151_v15 = vpop.permute.xlu0 %1150 }
 0x96e   : > { %v1154_v16 = vpop.permute.xlu1 %1153 }
 0x96f   : > { %1191 = vmatpush1.bf16.msra.mxu0 %v1143_v13  ;;  %v2091_v13 = vld [vmem:[%s2938_s6 + $0x38] sm:$0xff] }
 0x970   : > { %1192 = vmatprep.subr.bf16.mxu0 %v2292_v2  ;;  %v1158_v17 = vpop.permute.xlu0 %1157 }
 0x973   : > { %1193 = vmatpush1.bf16.msra.mxu0 %v1147_v14  ;;  %v2269_v14 = vld [vmem:[%s2937_s5 + $0x34] ss:$8 sps:$4 sm:$0xff]  }
 0x974   : > { %1194 = vmatprep.subr.bf16.mxu0 %v2292_v2 }
 0x977   : > { %1195 = vmatpush1.bf16.msra.mxu0 %v1151_v15  ;;  %v2097_v15 = vld [vmem:[%s2940_s8 + $0x30] sm:$0xff] }
 0x978   : > { %1196 = vmatprep.subr.bf16.mxu0 %v2292_v2 }
 0x97b   : > { %1197 = vmatpush1.bf16.msra.mxu0 %v1154_v16  ;;  %v2098_v16 = vld [vmem:[%s2940_s8 + $0x38] sm:$0xff] }
 0x97c   : > { %1198 = vmatprep.subr.bf16.mxu0 %v2292_v2 }
 0x97f   : > { %1199 = vmatpush1.bf16.msra.mxu0 %v1158_v17  ;;  %v1163_v19 = vpop.permute.xlu1 %1162 }
 0x980   : > { %2194 = vmatprep.subr.bf16.mxu0 %v2290_v0 }
 0x981   : > { %v1168_v26 = vpop.permute.xlu0 %1167 }
 0x982   : > { %1215 = vmatmul.mubr.bf16.vlgmr.msra.gmra.mrb[12].mxu0 %v2267_v18 }
 0x983   : > { %2196 = vmatprep.mubr.msk.bf16.mxu0 %vm2291_vm0, %v2290_v0  ;;  %v1235_v38 = vpop.permute.xlu1 %1234 }
 0x985   : > { %v1240_v44 = vpop.permute.xlu0 %1239 }
 0xa55   : > { %v1216_v22 = vpop.f32.mrb[12].mxu0 }
 0xa56   : > { %v1217_v23 = vadd.f32 %v1216_v22, %v1163_v19  ;;  %v1218_v24 = vpop.f32.mrb[13].mxu0 }
 0xa57   : > { %v1219_v27 = vpop.f32.mrb[14].mxu0 }
 0xa58   : > { %v1220_v32 = vadd.f32 %v1219_v27, %v1168_v26  ;;  %v1221_v20 = vpop.f32.mrb[15].mxu0  ;;  %v1223_v34 = vmax.f32 %v1217_v23, 0.0 }
 0xa5a   : > { %v1224_v35 = vmax.f32 %v1220_v32, 0.0  ;;  %v2271_v32 = vld [vmem:[%s2937_s5 + $0x30] ss:$8 sps:$4 sm:$0xff]  }
 0xa5c   : > { %v1228_v36 = vpack.c.bf16 %v1224_v35, %v1223_v34 }
 0xa5e   : > { %2189 = vmatpush3.bf16.msra.mxu1 %v1228_v36 }
 0xa5f   : > { %1384 = vmatprep.subr.bf16.mxu1 %v2292_v2 }
 0xa61   : > { %2191 = vmatmul.mubr.msk.bf16.vlgmr.msra.gmra.mrb[12].mxu1 %vm642_vm7, %v2268_v37 }
 0xa62   : > { %2094 = vmatprep.mubr.msk.bf16.mxu1 %vm642_vm7, %v2269_v14 }
 0xb34   : > { %v1284_v25 = vpop.f32.mrb[12].mxu1 }
 0xb35   : > { %v1285_v28 = vadd.f32 %v1284_v25, %v1235_v38  ;;  %v2192_v43 = vpop.f32.mrb[13].mxu1 }
 0xb36   : > { %v1287_v30 = vpop.f32.mrb[14].mxu1 }
 0xb37   : > { %v2687_v31 = vadd.f32 %v1285_v28, %v1091_v39  ;;  %v1288_v45 = vadd.f32 %v1287_v30, %v1240_v44  ;;  %v2193_v46 = vpop.f32.mrb[15].mxu1 }
 0xb39   : > { %v1293_v48 = vmax.f32 %v2687_v31, 0.0  ;;  %v2692_v49 = vadd.f32 %v1288_v45, %v1092_v41  ;;  %v2272_v45 = vld [vmem:[%s2939_s7 + $0x18] sm:$0xff]  }
 0xb3b   : > { %v1294_v51 = vmax.f32 %v2692_v49, 0.0  ;;  %1303 = vrot.lane.b32.xlu1 %v1293_v48, %s2296_s13 }
 0xb3d   : > { %1305 = vrot.lane.b32.xlu0 %v1294_v51, %s2296_s13 }
 0xbad   : > { %v1304_v21 = vpop.permute.xlu1 %1303 }
 0xbae   : > { %v1309_v39 = vsel %vm551_vm5, 0.0, %v1304_v21 }
 0xbaf   : > { %v1311_v52 = vsel %vm554_vm6, %v1309_v39, 0.0  ;;  %v1306_v53 = vpop.permute.xlu0 %1305 }
 0xbb0   : > { %v1310_v40 = vsel %vm551_vm5, 0.0, %v1306_v53  ;;  %v1317_v54 = vmul.f32 %v1311_v52, %v2414_v33  ;;  %v1313_v56 = vmul.f32 %v2408_v29, %v1311_v52  ;;  %v1320_v63 = vmul.f32 %v1311_v52, %v2422_v42 }
 0xbb1   : > { %v1312_v41 = vsel %vm554_vm6, %v1310_v40, 0.0  ;;  %v1323_v4 = vmul.f32 %v1311_v52, %v2427_v47  ;;  %v1326_v7 = vmul.f32 %v1311_v52, %v2431_v50  ;;  %v1329_v10 = vmul.f32 %v1311_v52, %v2439_v55 }
 0xbb2   : > { %v1316_v57 = vpack.c.bf16 %v1312_v41, %v1311_v52  ;;  %v1318_v58 = vmul.f32 %v1312_v41, %v2414_v33  ;;  %v1314_v59 = vmul.f32 %v2408_v29, %v1312_v41  ;;  %v1321_v60 = vmul.f32 %v1312_v41, %v2422_v42 }
 0xbb3   : > { %v1324_v3 = vmul.f32 %v1312_v41, %v2427_v47  ;;  %v1327_v5 = vmul.f32 %v1312_v41, %v2431_v50  ;;  %v1330_v9 = vmul.f32 %v1312_v41, %v2439_v55 }
 0xbb4   : > { %1333 = vrot.lane.b32.xlu1 %v1316_v57, %s2299_s16  ;;  %v1319_v61 = vpack.c.bf16 %v1318_v58, %v1317_v54  ;;  %v1315_v62 = vpack.c.bf16 %v1314_v59, %v1313_v56  ;;  %v1322_v1 = vpack.c.bf16 %v1321_v60, %v1320_v63 }
 0xbb5   : > { %v1325_v6 = vpack.c.bf16 %v1324_v3, %v1323_v4  ;;  %v1328_v8 = vpack.c.bf16 %v1327_v5, %v1326_v7  ;;  %v1331_v11 = vpack.c.bf16 %v1330_v9, %v1329_v10 }
 0xbb6   : > { %1337 = vrot.lane.b32.xlu0 %v1319_v61, %s2300_s19  ;;  %1385 = vmatpush1.bf16.msra.mxu1 %v1315_v62 }
 0xbb7   : > { %1386 = vmatprep.subr.bf16.mxu1 %v2292_v2 }
 0xbb8   : > { %1341 = vrot.lane.b32.xlu1 %v1322_v1, %s2301_s20 }
 0xbba   : > { %1344 = vrot.lane.b32.xlu0 %v1316_v57, %s2302_s21 }
 0xbbc   : > { %1348 = vrot.lane.b32.xlu1 %v1325_v6, %s2303_s22 }
 0xbbe   : > { %1352 = vrot.lane.b32.xlu0 %v1328_v8, %s2304_s23 }
 0xbc0   : > { %1355 = vrot.lane.b32.xlu1 %v1316_v57, %s2305_s24 }
 0xbc2   : > { %1359 = vrot.lane.b32.xlu0 %v1331_v11, %s2306_s25 }
 0xbc4   : > { %1364 = vperm.xlu1 %2244, %v2090_v12  }
 0xbc6   : > { %1369 = vperm.xlu0 %2243, %v2091_v13  }
 0xbc8   : > { %1436 = vperm.xlu1 %2244, %v2097_v15  }
 0xbca   : > { %1441 = vperm.xlu0 %2243, %v2098_v16  }
 0xc26   : > { %v1334_v17 = vpop.permute.xlu1 %1333 }
 0xc27   : > { %1387 = vmatpush1.bf16.msra.mxu1 %v1334_v17 }
 0xc28   : > { %1388 = vmatprep.subr.bf16.mxu1 %v2292_v2  ;;  %v1338_v18 = vpop.permute.xlu0 %1337 }
 0xc2a   : > { %v1342_v19 = vpop.permute.xlu1 %1341 }
 0xc2b   : > { %1389 = vmatpush1.bf16.msra.mxu1 %v1338_v18 }
 0xc2c   : > { %1390 = vmatprep.subr.bf16.mxu1 %v2292_v2  ;;  %v1345_v22 = vpop.permute.xlu0 %1344 }
 0xc2e   : > { %v1349_v23 = vpop.permute.xlu1 %1348 }
 0xc2f   : > { %1391 = vmatpush1.bf16.msra.mxu1 %v1342_v19  ;;  %v2103_v19 = vld [vmem:[%s2938_s6 + $0x40] sm:$0xff] }
 0xc30   : > { %1392 = vmatprep.subr.bf16.mxu1 %v2292_v2  ;;  %v1353_v24 = vpop.permute.xlu0 %1352 }
 0xc32   : > { %v1356_v26 = vpop.permute.xlu1 %1355 }
 0xc33   : > { %1393 = vmatpush1.bf16.msra.mxu1 %v1345_v22  ;;  %v2104_v22 = vld [vmem:[%s2938_s6 + $0x48] sm:$0xff] }
 0xc34   : > { %1394 = vmatprep.subr.bf16.mxu1 %v2292_v2  ;;  %v1360_v27 = vpop.permute.xlu0 %1359 }
 0xc37   : > { %1395 = vmatpush1.bf16.msra.mxu1 %v1349_v23  ;;  %v2273_v23 = vld [vmem:[%s2937_s5 + $0x44] ss:$8 sps:$4 sm:$0xff]  }
 0xc38   : > { %1396 = vmatprep.subr.bf16.mxu1 %v2292_v2 }
 0xc3b   : > { %1397 = vmatpush1.bf16.msra.mxu1 %v1353_v24  ;;  %v2110_v24 = vld [vmem:[%s2940_s8 + $0x40] sm:$0xff] }
 0xc3c   : > { %1398 = vmatprep.subr.bf16.mxu1 %v2292_v2 }
 0xc3f   : > { %1399 = vmatpush1.bf16.msra.mxu1 %v1356_v26  ;;  %v2111_v26 = vld [vmem:[%s2940_s8 + $0x48] sm:$0xff] }
 0xc40   : > { %1400 = vmatprep.subr.bf16.mxu1 %v2292_v2 }
 0xc43   : > { %1401 = vmatpush1.bf16.msra.mxu1 %v1360_v27  ;;  %v1365_v20 = vpop.permute.xlu1 %1364 }
 0xc44   : > { %2200 = vmatprep.subr.bf16.mxu1 %v2290_v0 }
 0xc45   : > { %v1370_v37 = vpop.permute.xlu0 %1369 }
 0xc46   : > { %1417 = vmatmul.mubr.bf16.vlgmr.msra.gmra.mrb[16].mxu1 %v2271_v32 }
 0xc47   : > { %2202 = vmatprep.mubr.msk.bf16.mxu1 %vm2291_vm0, %v2290_v0  ;;  %v1437_v46 = vpop.permute.xlu1 %1436 }
 0xc49   : > { %v1442_v53 = vpop.permute.xlu0 %1441 }
 0xd19   : > { %v1418_v34 = vpop.f32.mrb[16].mxu1 }
 0xd1a   : > { %v1419_v35 = vadd.f32 %v1418_v34, %v1365_v20  ;;  %v1420_v36 = vpop.f32.mrb[17].mxu1 }
 0xd1b   : > { %v1421_v38 = vpop.f32.mrb[18].mxu1 }
 0xd1c   : > { %v1422_v25 = vadd.f32 %v1421_v38, %v1370_v37  ;;  %v1423_v28 = vpop.f32.mrb[19].mxu1  ;;  %v1425_v43 = vmax.f32 %v1419_v35, 0.0 }
 0xd1e   : > { %v1426_v44 = vmax.f32 %v1422_v25, 0.0  ;;  %v2275_v25 = vld [vmem:[%s2937_s5 + $0x40] ss:$8 sps:$4 sm:$0xff]  }
 0xd20   : > { %v1430_v30 = vpack.c.bf16 %v1426_v44, %v1425_v43 }
 0xd22   : > { %2195 = vmatpush3.bf16.msra.mxu0 %v1430_v30 }
 0xd23   : > { %1586 = vmatprep.subr.bf16.mxu0 %v2292_v2 }
 0xd25   : > { %2197 = vmatmul.mubr.msk.bf16.vlgmr.msra.gmra.mrb[16].mxu0 %vm642_vm7, %v2272_v45 }
 0xd26   : > { %2107 = vmatprep.mubr.msk.bf16.mxu0 %vm642_vm7, %v2273_v23 }
 0xdf8   : > { %v1486_v21 = vpop.f32.mrb[16].mxu0 }
 0xdf9   : > { %v1487_v39 = vadd.f32 %v1486_v21, %v1437_v46  ;;  %v2198_v52 = vpop.f32.mrb[17].mxu0 }
 0xdfa   : > { %v1489_v40 = vpop.f32.mrb[18].mxu0 }
 0xdfb   : > { %v2762_v41 = vadd.f32 %v1487_v39, %v1293_v48  ;;  %v1490_v54 = vadd.f32 %v1489_v40, %v1442_v53  ;;  %v2199_v56 = vpop.f32.mrb[19].mxu0 }
 0xdfd   : > { %v1495_v57 = vmax.f32 %v2762_v41, 0.0  ;;  %v2767_v58 = vadd.f32 %v1490_v54, %v1294_v51  ;;  %v2276_v54 = vld [vmem:[%s2939_s7 + $0x20] sm:$0xff]  }
 0xdff   : > { %v1496_v59 = vmax.f32 %v2767_v58, 0.0  ;;  %1505 = vrot.lane.b32.xlu1 %v1495_v57, %s2296_s13 }
 0xe01   : > { %1507 = vrot.lane.b32.xlu0 %v1496_v59, %s2296_s13 }
 0xe71   : > { %v1506_v31 = vpop.permute.xlu1 %1505 }
 0xe72   : > { %v1511_v48 = vsel %vm551_vm5, 0.0, %v1506_v31 }
 0xe73   : > { %v1513_v60 = vsel %vm554_vm6, %v1511_v48, 0.0  ;;  %v1508_v61 = vpop.permute.xlu0 %1507 }
 0xe74   : > { %v1512_v49 = vsel %vm551_vm5, 0.0, %v1508_v61  ;;  %v1519_v62 = vmul.f32 %v1513_v60, %v2414_v33  ;;  %v1515_v63 = vmul.f32 %v2408_v29, %v1513_v60  ;;  %v1522_v8 = vmul.f32 %v1513_v60, %v2422_v42 }
 0xe75   : > { %v1514_v51 = vsel %vm554_vm6, %v1512_v49, 0.0  ;;  %v1525_v11 = vmul.f32 %v1513_v60, %v2427_v47  ;;  %v1528_v14 = vmul.f32 %v1513_v60, %v2431_v50  ;;  %v1531_v17 = vmul.f32 %v1513_v60, %v2439_v55 }
 0xe76   : > { %v1518_v1 = vpack.c.bf16 %v1514_v51, %v1513_v60  ;;  %v1520_v3 = vmul.f32 %v1514_v51, %v2414_v33  ;;  %v1516_v4 = vmul.f32 %v2408_v29, %v1514_v51  ;;  %v1523_v5 = vmul.f32 %v1514_v51, %v2422_v42 }
 0xe77   : > { %v1526_v10 = vmul.f32 %v1514_v51, %v2427_v47  ;;  %v1529_v12 = vmul.f32 %v1514_v51, %v2431_v50  ;;  %v1532_v16 = vmul.f32 %v1514_v51, %v2439_v55 }
 0xe78   : > { %1535 = vrot.lane.b32.xlu1 %v1518_v1, %s2299_s16  ;;  %v1521_v6 = vpack.c.bf16 %v1520_v3, %v1519_v62  ;;  %v1517_v7 = vpack.c.bf16 %v1516_v4, %v1515_v63  ;;  %v1524_v9 = vpack.c.bf16 %v1523_v5, %v1522_v8 }
 0xe79   : > { %v1527_v13 = vpack.c.bf16 %v1526_v10, %v1525_v11  ;;  %v1530_v15 = vpack.c.bf16 %v1529_v12, %v1528_v14  ;;  %v1533_v18 = vpack.c.bf16 %v1532_v16, %v1531_v17 }
 0xe7a   : > { %1539 = vrot.lane.b32.xlu0 %v1521_v6, %s2300_s19  ;;  %1587 = vmatpush1.bf16.msra.mxu0 %v1517_v7 }
 0xe7b   : > { %1588 = vmatprep.subr.bf16.mxu0 %v2292_v2 }
 0xe7c   : > { %1543 = vrot.lane.b32.xlu1 %v1524_v9, %s2301_s20 }
 0xe7e   : > { %1546 = vrot.lane.b32.xlu0 %v1518_v1, %s2302_s21 }
 0xe80   : > { %1550 = vrot.lane.b32.xlu1 %v1527_v13, %s2303_s22 }
 0xe82   : > { %1554 = vrot.lane.b32.xlu0 %v1530_v15, %s2304_s23 }
 0xe84   : > { %1557 = vrot.lane.b32.xlu1 %v1518_v1, %s2305_s24 }
 0xe86   : > { %1561 = vrot.lane.b32.xlu0 %v1533_v18, %s2306_s25 }
 0xe88   : > { %1566 = vperm.xlu1 %2244, %v2103_v19  }
 0xe8a   : > { %1571 = vperm.xlu0 %2243, %v2104_v22  }
 0xe8c   : > { %1638 = vperm.xlu1 %2244, %v2110_v24  }
 0xe8e   : > { %1643 = vperm.xlu0 %2243, %v2111_v26   ;;  %v2277_v26 = vld [vmem:[%s2937_s5 + $0x54] ss:$8 sps:$4 sm:$0xff]  }
 0xeea   : > { %v1536_v27 = vpop.permute.xlu1 %1535 }
 0xeeb   : > { %1589 = vmatpush1.bf16.msra.mxu0 %v1536_v27  ;;  %v2124_v27 = vld [vmem:[%s2940_s8 + $0x58] sm:$0xff] }
 0xeec   : > { %1590 = vmatprep.subr.bf16.mxu0 %v2292_v2  ;;  %v1540_v32 = vpop.permute.xlu0 %1539 }
 0xeee   : > { %v1544_v20 = vpop.permute.xlu1 %1543 }
 0xeef   : > { %1591 = vmatpush1.bf16.msra.mxu0 %v1540_v32  ;;  %v1910_v32 = vld [vmem:[%s2942_s10] sm:$0xff] }
 0xef0   : > { %1592 = vmatprep.subr.bf16.mxu0 %v2292_v2  ;;  %v1547_v34 = vpop.permute.xlu0 %1546 }
 0xef2   : > { %v1551_v35 = vpop.permute.xlu1 %1550 }
 0xef3   : > { %1593 = vmatpush1.bf16.msra.mxu0 %v1544_v20  ;;  %v1911_v20 = vld [vmem:[%s2942_s10 + $0x8] sm:$0xff] }
 0xef4   : > { %1594 = vmatprep.subr.bf16.mxu0 %v2292_v2  ;;  %v1555_v36 = vpop.permute.xlu0 %1554 }
 0xef6   : > { %v1558_v37 = vpop.permute.xlu1 %1557 }
 0xef7   : > { %1595 = vmatpush1.bf16.msra.mxu0 %v1547_v34 }
 0xef8   : > { %1596 = vmatprep.subr.bf16.mxu0 %v2292_v2  ;;  %v1562_v38 = vpop.permute.xlu0 %1561 }
 0xefb   : > { %1597 = vmatpush1.bf16.msra.mxu0 %v1551_v35 }
 0xefc   : > { %1598 = vmatprep.subr.bf16.mxu0 %v2292_v2 }
 0xeff   : > { %1599 = vmatpush1.bf16.msra.mxu0 %v1555_v36 }
 0xf00   : > { %1600 = vmatprep.subr.bf16.mxu0 %v2292_v2 }
 0xf03   : > { %1601 = vmatpush1.bf16.msra.mxu0 %v1558_v37 }
 0xf04   : > { %1602 = vmatprep.subr.bf16.mxu0 %v2292_v2 }
 0xf07   : > { %1603 = vmatpush1.bf16.msra.mxu0 %v1562_v38  ;;  %v1567_v28 = vpop.permute.xlu1 %1566 }
 0xf08   : > { %2206 = vmatprep.subr.bf16.mxu0 %v2290_v0 }
 0xf09   : > { %v1572_v45 = vpop.permute.xlu0 %1571 }
 0xf0a   : > { %1619 = vmatmul.mubr.bf16.vlgmr.msra.gmra.mrb[20].mxu0 %v2275_v25 }
 0xf0b   : > { %2208 = vmatprep.mubr.msk.bf16.mxu0 %vm2291_vm0, %v2290_v0  ;;  %v1639_v56 = vpop.permute.xlu1 %1638 }
 0xf0d   : > { %v1644_v61 = vpop.permute.xlu0 %1643 }
 0xfdd   : > { %v1620_v43 = vpop.f32.mrb[20].mxu0 }
 0xfde   : > { %v1621_v44 = vadd.f32 %v1620_v43, %v1567_v28  ;;  %v1622_v30 = vpop.f32.mrb[21].mxu0 }
 0xfdf   : > { %v1623_v46 = vpop.f32.mrb[22].mxu0 }
 0xfe0   : > { %v1624_v21 = vadd.f32 %v1623_v46, %v1572_v45  ;;  %v1625_v39 = vpop.f32.mrb[23].mxu0  ;;  %v1627_v52 = vmax.f32 %v1621_v44, 0.0  ;;  %v2279_v44 = vld [vmem:[%s2937_s5 + $0x50] ss:$8 sps:$4 sm:$0xff]  }
 0xfe2   : > { %v1628_v53 = vmax.f32 %v1624_v21, 0.0 }
 0xfe4   : > { %v1632_v40 = vpack.c.bf16 %v1628_v53, %v1627_v52 }
 0xfe6   : > { %2201 = vmatpush3.bf16.msra.mxu1 %v1632_v40 }
 0xfe7   : > { %1788 = vmatprep.subr.bf16.mxu1 %v2292_v2 }
 0xfe9   : > { %2203 = vmatmul.mubr.msk.bf16.vlgmr.msra.gmra.mrb[20].mxu1 %vm642_vm7, %v2276_v54 }
 0xfea   : > { %2120 = vmatprep.mubr.msk.bf16.mxu1 %vm642_vm7, %v2277_v26 }
0x10bc   : > { %v1688_v31 = vpop.f32.mrb[20].mxu1 }
0x10bd   : > { %v1689_v48 = vadd.f32 %v1688_v31, %v1639_v56  ;;  %v2204_v60 = vpop.f32.mrb[21].mxu1 }
0x10be   : > { %v1691_v49 = vpop.f32.mrb[22].mxu1 }
0x10bf   : > { %v2837_v51 = vadd.f32 %v1689_v48, %v1495_v57  ;;  %v1692_v62 = vadd.f32 %v1691_v49, %v1644_v61  ;;  %v2205_v63 = vpop.f32.mrb[23].mxu1 }
0x10c1   : > { %v1697_v1 = vmax.f32 %v2837_v51, 0.0  ;;  %v2842_v3 = vadd.f32 %v1692_v62, %v1496_v59  ;;  %v2281_v51 = vld [vmem:[%s2941_s9] sm:$0xff]  }
0x10c3   : > { %v1698_v4 = vmax.f32 %v2842_v3, 0.0  ;;  %1707 = vrot.lane.b32.xlu1 %v1697_v1, %s2296_s13 }
0x10c5   : > { %1709 = vrot.lane.b32.xlu0 %v1698_v4, %s2296_s13 }
0x1135   : > { %v1708_v41 = vpop.permute.xlu1 %1707 }
0x1136   : > { %v1713_v57 = vsel %vm551_vm5, 0.0, %v1708_v41 }
0x1137   : > { %v1715_v5 = vsel %vm554_vm6, %v1713_v57, 0.0  ;;  %v1710_v6 = vpop.permute.xlu0 %1709 }
0x1138   : > { %v1714_v58 = vsel %vm551_vm5, 0.0, %v1710_v6  ;;  %v1721_v7 = vmul.f32 %v1715_v5, %v2414_v33  ;;  %v1717_v8 = vmul.f32 %v2408_v29, %v1715_v5  ;;  %v1724_v15 = vmul.f32 %v1715_v5, %v2422_v42 }
0x1139   : > { %v1716_v59 = vsel %vm554_vm6, %v1714_v58, 0.0  ;;  %v1730_v19 = vmul.f32 %v1715_v5, %v2431_v50  ;;  %v1733_v23 = vmul.f32 %v1715_v5, %v2439_v55 }
0x113a   : > { %v1720_v9 = vpack.c.bf16 %v1716_v59, %v1715_v5  ;;  %v1722_v10 = vmul.f32 %v1716_v59, %v2414_v33  ;;  %v1718_v11 = vmul.f32 %v2408_v29, %v1716_v59  ;;  %v1725_v12 = vmul.f32 %v1716_v59, %v2422_v42 }
0x113b   : > { %v1728_v17 = vmul.f32 %v1716_v59, %v2427_v47  ;;  %v1727_v29 = vmul.f32 %v1715_v5, %v2427_v47  ;;  %v1731_v33 = vmul.f32 %v1716_v59, %v2431_v50  ;;  %v1734_v22 = vmul.f32 %v1716_v59, %v2439_v55  ;;  %v2116_v47 = vld [vmem:[%s2938_s6 + $0x50] sm:$0xff]  ;;  %v2117_v50 = vld [vmem:[%s2938_s6 + $0x58] sm:$0xff] }
0x113c   : > { %1737 = vrot.lane.b32.xlu1 %v1720_v9, %s2299_s16  ;;  %v1723_v13 = vpack.c.bf16 %v1722_v10, %v1721_v7  ;;  %v1719_v14 = vpack.c.bf16 %v1718_v11, %v1717_v8  ;;  %v1726_v16 = vpack.c.bf16 %v1725_v12, %v1724_v15  ;;  %v2123_v55 = vld [vmem:[%s2940_s8 + $0x50] sm:$0xff] }
0x113d   : > { %v1729_v18 = vpack.c.bf16 %v1728_v17, %v1727_v29  ;;  %v1732_v42 = vpack.c.bf16 %v1731_v33, %v1730_v19  ;;  %v1735_v24 = vpack.c.bf16 %v1734_v22, %v1733_v23 }
0x113e   : > { %1741 = vrot.lane.b32.xlu0 %v1723_v13, %s2300_s19  ;;  %1789 = vmatpush1.bf16.msra.mxu1 %v1719_v14 }
0x113f   : > { %1790 = vmatprep.subr.bf16.mxu1 %v2292_v2 }
0x1140   : > { %1745 = vrot.lane.b32.xlu1 %v1726_v16, %s2301_s20  ;;  %s2132_s20 = sshll.u32 %s2945_s18, 4 }
0x1142   : > { %1748 = vrot.lane.b32.xlu0 %v1720_v9, %s2302_s21 }
0x1144   : > { %1752 = vrot.lane.b32.xlu1 %v1729_v18, %s2303_s22 }
0x1146   : > { %1756 = vrot.lane.b32.xlu0 %v1732_v42, %s2304_s23  ;;  %s386_s23 = scalar_lea.vmem %s2943_s11, %s2132_s20 }
0x1148   : > { %1759 = vrot.lane.b32.xlu1 %v1720_v9, %s2305_s24 }
0x114a   : > { %1763 = vrot.lane.b32.xlu0 %v1735_v24, %s2306_s25 }
0x114c   : > { %1768 = vperm.xlu1 %2244, %v2116_v47  }
0x114e   : > { %1773 = vperm.xlu0 %2243, %v2117_v50  }
0x1150   : > { %1840 = vperm.xlu1 %2244, %v2123_v55  }
0x1152   : > { %1845 = vperm.xlu0 %2243, %v2124_v27  }
0x1154   : > { %1914 = vperm.xlu1 %2244, %v1910_v32  }
0x1156   : > { %1919 = vperm.xlu0 %2243, %v1911_v20  }
0x11ae   : > { %v1738_v34 = vpop.permute.xlu1 %1737 }
0x11af   : > { %1791 = vmatpush1.bf16.msra.mxu1 %v1738_v34 }
0x11b0   : > { %1792 = vmatprep.subr.bf16.mxu1 %v2292_v2  ;;  %v1742_v35 = vpop.permute.xlu0 %1741 }
0x11b2   : > { %v1746_v36 = vpop.permute.xlu1 %1745 }
0x11b3   : > { %1793 = vmatpush1.bf16.msra.mxu1 %v1742_v35 }
0x11b4   : > { %1794 = vmatprep.subr.bf16.mxu1 %v2292_v2  ;;  %v1749_v37 = vpop.permute.xlu0 %1748 }
0x11b6   : > { %v1753_v38 = vpop.permute.xlu1 %1752 }
0x11b7   : > { %1795 = vmatpush1.bf16.msra.mxu1 %v1746_v36 }
0x11b8   : > { %1796 = vmatprep.subr.bf16.mxu1 %v2292_v2  ;;  %v1757_v25 = vpop.permute.xlu0 %1756 }
0x11ba   : > { %v1760_v28 = vpop.permute.xlu1 %1759 }
0x11bb   : > { %1797 = vmatpush1.bf16.msra.mxu1 %v1749_v37 }
0x11bc   : > { %1798 = vmatprep.subr.bf16.mxu1 %v2292_v2  ;;  %v1764_v43 = vpop.permute.xlu0 %1763 }
0x11bf   : > { %1799 = vmatpush1.bf16.msra.mxu1 %v1753_v38 }
0x11c0   : > { %1800 = vmatprep.subr.bf16.mxu1 %v2292_v2 }
0x11c3   : > { %1801 = vmatpush1.bf16.msra.mxu1 %v1757_v25 }
0x11c4   : > { %1802 = vmatprep.subr.bf16.mxu1 %v2292_v2 }
0x11c7   : > { %1803 = vmatpush1.bf16.msra.mxu1 %v1760_v28 }
0x11c8   : > { %1804 = vmatprep.subr.bf16.mxu1 %v2292_v2  ;;  %v2280_v2 = vld [vmem:[%s2939_s7 + $0x28] sm:$0xff]  }
0x11cb   : > { %1805 = vmatpush1.bf16.msra.mxu1 %v1764_v43  ;;  %v1769_v30 = vpop.permute.xlu1 %1768 }
0x11cd   : > { %v1774_v39 = vpop.permute.xlu0 %1773 }
0x11ce   : > { %1821 = vmatmul.mubr.bf16.vlgmr.msra.gmra.mrb[24].mxu1 %v2279_v44 }
0x11cf   : > { %v1841_v48 = vpop.permute.xlu1 %1840 }
0x11d1   : > { %v1846_v62 = vpop.permute.xlu0 %1845 }
0x11d5   : > { %v1920_v12 = vpop.permute.xlu0 %1919 }
0x12a1   : > { %v1822_v45 = vpop.f32.mrb[24].mxu1 }
0x12a2   : > { %v1823_v46 = vadd.f32 %v1822_v45, %v1769_v30  ;;  %v1824_v21 = vpop.f32.mrb[25].mxu1 }
0x12a3   : > { %v1825_v52 = vpop.f32.mrb[26].mxu1 }
0x12a4   : > { %v1826_v53 = vadd.f32 %v1825_v52, %v1774_v39  ;;  %v1827_v40 = vpop.f32.mrb[27].mxu1  ;;  %v1829_v54 = vmax.f32 %v1823_v46, 0.0 }
0x12a6   : > { %v1830_v56 = vmax.f32 %v1826_v53, 0.0 }
0x12a8   : > { %v1834_v31 = vpack.c.bf16 %v1830_v56, %v1829_v54 }
0x12aa   : > { %2207 = vmatpush3.bf16.msra.mxu0 %v1834_v31 }
0x12ab   : > { %2212 = vmatprep.subr.bf16.mxu0 %v2290_v0 }
0x12ad   : > { %2209 = vmatmul.mubr.msk.bf16.vlgmr.msra.gmra.mrb[24].mxu0 %vm642_vm7, %v2280_v2 }
0x12ae   : > { %2214 = vmatprep.mubr.msk.bf16.mxu0 %vm2291_vm0, %v2290_v0 }
0x1380   : > { %v1890_v60 = vpop.f32.mrb[24].mxu0 }
0x1381   : > { %v1891_v61 = vadd.f32 %v1890_v60, %v1841_v48  ;;  %v2210_v49 = vpop.f32.mrb[25].mxu0 }
0x1382   : > { %v1893_v63 = vpop.f32.mrb[26].mxu0 }
0x1383   : > { %v1897_v41 = vadd.f32 %v1891_v61, %v1697_v1  ;;  %v1894_v57 = vadd.f32 %v1893_v63, %v1846_v62  ;;  %v2211_v5 = vpop.f32.mrb[27].mxu0  ;;  %v1915_v1 = vpop.permute.xlu1 %1914 }
0x1385   : > { %v1899_v6 = vmax.f32 %v1897_v41, 0.0  ;;  %v1898_v58 = vadd.f32 %v1894_v57, %v1698_v4 }
0x1387   : > { %v1903_v59 = vmul.f32 0.01, %v1899_v6  ;;  %v1900_v7 = vmax.f32 %v1898_v58, 0.0  ;;  %vm1901_vm10 = vcmp.gt.f32.partialorder %v1899_v6, 0.0 }
0x1389   : > { %vm1902_vm11 = vcmp.gt.f32.partialorder %v1900_v7, 0.0  ;;  %v1904_v0 = vmul.f32 0.01, %v1900_v7  ;;  %v1905_v8 = vsel %vm1901_vm10, %v1899_v6, %v1903_v59 }
0x138b   : > { %v1906_v9 = vsel %vm1902_vm11, %v1900_v7, %v1904_v0 }
0x138c   : > { %v1909_v10 = vpack.c.bf16 %v1906_v9, %v1905_v8 }
0x138e   : > { %2213 = vmatpush3.bf16.msra.mxu0 %v1909_v10 }
0x1391   : > { %2215 = vmatmul.mubr.msk.bf16.vlgmr.msra.gmra.mrb[28].mxu0 %vm642_vm7, %v2281_v51 }
0x1464   : > { %v1964_v11 = vpop.f32.mrb[28].mxu0 }
0x1465   : > { %v1965_v3 = vadd.f32 %v1964_v11, %v1915_v1  ;;  %v2216_v4 = vpop.f32.mrb[29].mxu0 }
0x1466   : > { %v1967_v13 = vpop.f32.mrb[30].mxu0 }
0x1467   : > { %vm1971_vm12 = vcmp.gt.f32.partialorder %v1965_v3, 0.0  ;;  %v1973_v14 = vmul.f32 0.01, %v1965_v3  ;;  %v1968_v15 = vadd.f32 %v1967_v13, %v1920_v12  ;;  %v2217_v16 = vpop.f32.mrb[31].mxu0 }
0x1469   : > { %v1975_v17 = vsel %vm1971_vm12, %v1965_v3, %v1973_v14  ;;  %vm1972_vm13 = vcmp.gt.f32.partialorder %v1968_v15, 0.0  ;;  %v1974_v29 = vmul.f32 0.01, %v1968_v15 }
0x146a   : > { %1977 = vst.msk [vmem:[%s386_s23] sm:$0xff] %vm642_vm7, %v1975_v17 }
0x146b   : > { %v1976_v33 = vsel %vm1972_vm13, %v1968_v15, %v1974_v29 }
0x146c   : > { %1978 = vst.msk [vmem:[%s386_s23 + $0x8] sm:$0xff] %vm642_vm7, %v1976_v33 }
0x146d PF: > { %s21_s17 = sadd.s32 1, %s2288_s17  }
0x146e   : > { %p18_p4 = scmp.ge.s32.totalorder %s21_s17, 4  }
0x1470   :  { %20 = sbr.rel (!%p18_p4) target bundleno = 1 (0x1), region = 114 }

</bundles_post_ra>
